<compile_context>
chip_gen: v5e
topology: v5e:2x2
jax: 0.10.0
libtpu: 0.0.40
codegen_flags: <defaults>
</compile_context>

<pallas_src>
import functools

import jax
import jax.numpy as jnp
from jax import lax
from jax.experimental import pallas as pl
from jax.experimental.pallas import tpu as pltpu

_VMEM_LIMIT = 32 * 1024 * 1024   # raises v5e's 16 MiB scoped default; == v6e/v7x default


def _compiler_params(*sem):
    return pltpu.CompilerParams(dimension_semantics=sem, vmem_limit_bytes=_VMEM_LIMIT)


def _pick_row_block(n, cap=1024):
    """Largest row-block <= cap that tiles n rows and satisfies the (8,128) rule."""
    if n <= cap:
        return n
    for b in range(cap - cap % 8, 7, -8):
        if n % b == 0:
            return b
    return n   # no suitable divisor: fall back to a single (full) block


# ----------------------------------------------------------------------------------
# 3x3 convolution kernel: one NHWC image per grid step.
#  - halo handled in a VMEM scratch (no jnp.pad HBM copy)
#  - 9 per-tap matmuls over ALL Ho*Wo output pixels (full sublane dim on the MXU)
#  - optional fused prologue: x <- relu(x * scale + shift)  (previous BN+ReLU)
#  - epilogue: per-image per-channel [sum, sumsq] partial BatchNorm statistics
# ----------------------------------------------------------------------------------
def _conv3x3_kernel(*refs, stride, fused_prologue):
    if fused_prologue:
        x_ref, w_ref, scale_ref, shift_ref, y_ref, stats_ref, xpad = refs
    else:
        x_ref, w_ref, y_ref, stats_ref, xpad = refs
        scale_ref = shift_ref = None
    sh, sw = stride
    Hp, Wp, Cin = xpad.shape
    H, W = Hp - 2, Wp - 2
    _, Ho, Wo, Cout = y_ref.shape

    # Zero the 1-pixel halo every step (cheap; avoids any cross-core init hazard
    # when the "parallel" grid axis is sharded across v7x TensorCores).
    zrow = jnp.zeros((1, Wp, Cin), xpad.dtype)
    zcol = jnp.zeros((Hp, 1, Cin), xpad.dtype)
    xpad[0:1, :, :] = zrow
    xpad[Hp - 1:Hp, :, :] = zrow
    xpad[:, 0:1, :] = zcol
    xpad[:, Wp - 1:Wp, :] = zcol

    xin = x_ref[0].astype(jnp.float32)
    if fused_prologue:
        # Fused BN-affine + ReLU of the previous layer (scale/shift are per-channel).
        xin = jnp.maximum(xin * scale_ref[...] + shift_ref[...], 0.0)
    xpad[1:H + 1, 1:W + 1, :] = xin

    # 9 per-tap matmuls of shape (Ho*Wo, Cin) x (Cin, Cout), accumulated in f32.
    acc = jnp.zeros((Ho * Wo, Cout), jnp.float32)
    for kh in range(3):
        for kw in range(3):
            if sh == 1 and sw == 1:
                patch = xpad[kh:kh + Ho, kw:kw + Wo, :]
            else:
                # Downsampling blocks: strided tap loads (only 9 per image).
                patch = xpad[pl.ds(kh, Ho, sh), pl.ds(kw, Wo, sw), :]
            acc = acc + jnp.dot(patch.reshape(Ho * Wo, Cin), w_ref[kh, kw],
                                preferred_element_type=jnp.float32)

    # NOTE: conv bias is intentionally omitted — a per-channel bias followed by
    # training-mode BatchNorm is exactly cancelled by the mean subtraction.
    y_ref[0] = acc.reshape(Ho, Wo, Cout).astype(y_ref.dtype)
    stats_ref[0, 0:1, :] = jnp.sum(acc, axis=0, keepdims=True)
    stats_ref[0, 1:2, :] = jnp.sum(acc * acc, axis=0, keepdims=True)


def conv3x3_bn_stats(x_nhwc, w_hwio, *, stride=(1, 1), prologue=None):
    """y_raw = conv3x3(prologue(x)); also returns per-image [sum, sumsq] of y_raw."""
    N, H, W, Cin = x_nhwc.shape
    Cout = w_hwio.shape[-1]
    sh, sw = stride
    Ho = (H + 2 - 3) // sh + 1
    Wo = (W + 2 - 3) // sw + 1

    in_specs = [
        pl.BlockSpec((1, H, W, Cin), lambda n: (n, 0, 0, 0)),
        pl.BlockSpec((3, 3, Cin, Cout), lambda n: (0, 0, 0, 0)),
    ]
    args = [x_nhwc, w_hwio]
    if prologue is not None:
        scale, shift = prologue
        in_specs += [pl.BlockSpec((1, Cin), lambda n: (0, 0)),
                     pl.BlockSpec((1, Cin), lambda n: (0, 0))]
        args += [scale.astype(jnp.float32).reshape(1, Cin),
                 shift.astype(jnp.float32).reshape(1, Cin)]

    kernel = functools.partial(_conv3x3_kernel, stride=(sh, sw),
                               fused_prologue=prologue is not None)
    # TODO(synk): at ResNet scale, additionally tile over output-row blocks (2-row halo)
    # so per-step VMEM stays bounded on v7x (64 MiB) and the pipeline has real depth.
    y, stats = pl.pallas_call(
        kernel,
        out_shape=(jax.ShapeDtypeStruct((N, Ho, Wo, Cout), x_nhwc.dtype),
                   jax.ShapeDtypeStruct((N, 2, Cout), jnp.float32)),
        grid=(N,),
        in_specs=in_specs,
        out_specs=(pl.BlockSpec((1, Ho, Wo, Cout), lambda n: (n, 0, 0, 0)),
                   pl.BlockSpec((1, 2, Cout), lambda n: (n, 0, 0))),
        scratch_shapes=[pltpu.VMEM((H + 2, W + 2, Cin), jnp.float32)],
        compiler_params=_compiler_params("parallel"),
    )(*args)
    return y, stats


def _bn_scale_shift(stats, gamma, beta, count, eps=1e-5):
    """Tiny per-channel glue: fold batch mean/var (one-pass sums) into scale/shift."""
    s = jnp.sum(stats, axis=0)                   # (2, C): [sum, sumsq] over all pixels
    mean = s[0] / count
    var = s[1] / count - mean * mean             # biased variance (PyTorch training mode)
    scale = gamma * lax.rsqrt(var + eps)
    shift = beta - mean * scale
    return scale, shift


# ----------------------------------------------------------------------------------
# Finalize kernels: out = relu(y * scale + shift + skip)
# ----------------------------------------------------------------------------------
def _affine_add_relu_kernel(y_ref, skip_ref, scale_ref, shift_ref, o_ref):
    y = y_ref[...].astype(jnp.float32)
    o = y * scale_ref[...] + shift_ref[...] + skip_ref[...].astype(jnp.float32)
    o_ref[...] = jnp.maximum(o, 0.0).astype(o_ref.dtype)


def _affine_1x1_add_relu_kernel(y_ref, x_ref, w_ref, b_ref, scale_ref, shift_ref, o_ref):
    skip = jnp.dot(x_ref[...].astype(jnp.float32), w_ref[...],
                   preferred_element_type=jnp.float32) + b_ref[...]
    o = y_ref[...].astype(jnp.float32) * scale_ref[...] + shift_ref[...] + skip
    o_ref[...] = jnp.maximum(o, 0.0).astype(o_ref.dtype)


def finalize_identity(y2, skip_nhwc, scale, shift):
    """out = relu(bn2-affine(y2) + skip), lane-dense (rows,128) layout when possible."""
    N, Ho, Wo, C = y2.shape
    total = N * Ho * Wo * C
    if total % 128 == 0 and 128 % C == 0:
        # Pack channels into the 128-lane dim (reshape is a free bitcast in HBM);
        # per-channel affine params have period C | 128 so lane-tiling them is exact.
        rows, lanes = total // 128, 128
        y_flat = y2.reshape(rows, lanes)
        s_flat = skip_nhwc.reshape(rows, lanes)
        scale_l = jnp.tile(scale.astype(jnp.float32), lanes // C).reshape(1, lanes)
        shift_l = jnp.tile(shift.astype(jnp.float32), lanes // C).reshape(1, lanes)
    else:
        rows, lanes = N * Ho * Wo, C
        y_flat = y2.reshape(rows, lanes)
        s_flat = skip_nhwc.reshape(rows, lanes)
        scale_l = scale.astype(jnp.float32).reshape(1, lanes)
        shift_l = shift.astype(jnp.float32).reshape(1, lanes)

    tr = _pick_row_block(rows)
    out = pl.pallas_call(
        _affine_add_relu_kernel,
        out_shape=jax.ShapeDtypeStruct((rows, lanes), y2.dtype),
        grid=(rows // tr,),
        in_specs=[pl.BlockSpec((tr, lanes), lambda i: (i, 0)),
                  pl.BlockSpec((tr, lanes), lambda i: (i, 0)),
                  pl.BlockSpec((1, lanes), lambda i: (0, 0)),
                  pl.BlockSpec((1, lanes), lambda i: (0, 0))],
        out_specs=pl.BlockSpec((tr, lanes), lambda i: (i, 0)),
        compiler_params=_compiler_params("parallel"),
    )(y_flat, s_flat, scale_l, shift_l)
    return out.reshape(N, Ho, Wo, C)


def finalize_conv1x1(y2, x_skip, w3, b3, scale, shift):
    """out = relu(bn2-affine(y2) + x_skip @ w3 + b3), tiled over pixels."""
    N, Ho, Wo, Cout = y2.shape
    Cin = x_skip.shape[-1]
    M = N * Ho * Wo
    y_flat = y2.reshape(M, Cout)
    x_flat = x_skip.reshape(M, Cin)
    tm = _pick_row_block(M)
    out = pl.pallas_call(
        _affine_1x1_add_relu_kernel,
        out_shape=jax.ShapeDtypeStruct((M, Cout), y2.dtype),
        grid=(M // tm,),
        in_specs=[pl.BlockSpec((tm, Cout), lambda i: (i, 0)),
                  pl.BlockSpec((tm, Cin), lambda i: (i, 0)),
                  pl.BlockSpec((Cin, Cout), lambda i: (0, 0)),
                  pl.BlockSpec((1, Cout), lambda i: (0, 0)),
                  pl.BlockSpec((1, Cout), lambda i: (0, 0)),
                  pl.BlockSpec((1, Cout), lambda i: (0, 0))],
        out_specs=pl.BlockSpec((tm, Cout), lambda i: (i, 0)),
        compiler_params=_compiler_params("parallel"),
    )(y_flat, x_flat, w3.reshape(Cin, Cout),
      b3.astype(jnp.float32).reshape(1, Cout),
      scale.astype(jnp.float32).reshape(1, Cout),
      shift.astype(jnp.float32).reshape(1, Cout))
    return out.reshape(N, Ho, Wo, Cout)


# ----------------------------------------------------------------------------------
# Residual.forward
# ----------------------------------------------------------------------------------
def residual_forward(x_nchw, params, *, use_1x1conv=False, stride=(1, 1), eps=1e-5):
    # Layout glue: accept/return NCHW like PyTorch, compute in NHWC.
    # TODO(synk): fold the NCHW<->NHWC transposes into the first/last kernel to save
    # two XLA transpose passes over the activation at large scale.
    x = jnp.transpose(x_nchw, (0, 2, 3, 1))
    sh, sw = stride

    # conv1 (+ BN1 statistics from the epilogue); conv bias cancelled by BN.
    y1, st1 = conv3x3_bn_stats(x, params["w1"], stride=stride)
    N, Ho, Wo, C = y1.shape
    scale1, shift1 = _bn_scale_shift(st1, params["g1"], params["beta1"], N * Ho * Wo, eps)

    # conv2 with BN1-affine + ReLU fused into its prologue (+ BN2 statistics).
    y2, st2 = conv3x3_bn_stats(y1, params["w2"], stride=(1, 1), prologue=(scale1, shift1))
    scale2, shift2 = _bn_scale_shift(st2, params["g2"], params["beta2"], N * Ho * Wo, eps)

    if use_1x1conv:
        xs = x[:, ::sh, ::sw, :] if (sh, sw) != (1, 1) else x
        out = finalize_conv1x1(y2, xs, params["w3"], params["b3"], scale2, shift2)
    else:
        out = finalize_identity(y2, x, scale2, shift2)

    # TODO(synk): BatchNorm running_mean/running_var buffer updates (training side-state)
    # are not materialized; only the forward output is reproduced.
    return jnp.transpose(out, (0, 3, 1, 2))


# ----------------------------------------------------------------------------------
# Pure-JAX reference (same math, including the conv biases that BN cancels).
# ----------------------------------------------------------------------------------
def residual_ref(x_nchw, params, *, use_1x1conv=False, stride=(1, 1)):
    def conv(x, w, b, s, pad):
        y = lax.conv_general_dilated(x, w, window_strides=s, padding=pad,
                                     dimension_numbers=("NCHW", "HWIO", "NCHW"))
        return y + b[None, :, None, None]

    def bn(y, g, beta, eps=1e-5):
        mean = jnp.mean(y, axis=(0, 2, 3), keepdims=True)
        var = jnp.mean((y - mean) ** 2, axis=(0, 2, 3), keepdims=True)
        return (y - mean) * lax.rsqrt(var + eps) * g[None, :, None, None] \
            + beta[None, :, None, None]

    y = jax.nn.relu(bn(conv(x_nchw, params["w1"], params["b1"], stride, ((1, 1), (1, 1))),
                       params["g1"], params["beta1"]))
    y = bn(conv(y, params["w2"], params["b2"], (1, 1), ((1, 1), (1, 1))),
           params["g2"], params["beta2"])
    xi = x_nchw
    if use_1x1conv:
        xi = conv(x_nchw, params["w3"], params["b3"], stride, ((0, 0), (0, 0)))
    return jax.nn.relu(y + xi)


if __name__ == "__main__":
    key = jax.random.PRNGKey(0)

    def make_params(k, cin, cout, use_1x1conv):
        ks = jax.random.split(k, 10)
        p = dict(
            w1=0.1 * jax.random.normal(ks[0], (3, 3, cin, cout), jnp.float32),
            b1=0.1 * jax.random.normal(ks[1], (cout,), jnp.float32),
            w2=0.1 * jax.random.normal(ks[2], (3, 3, cout, cout), jnp.float32),
            b2=0.1 * jax.random.normal(ks[3], (cout,), jnp.float32),
            g1=1.0 + 0.1 * jax.random.normal(ks[4], (cout,), jnp.float32),
            beta1=0.1 * jax.random.normal(ks[5], (cout,), jnp.float32),
            g2=1.0 + 0.1 * jax.random.normal(ks[6], (cout,), jnp.float32),
            beta2=0.1 * jax.random.normal(ks[7], (cout,), jnp.float32),
        )
        if use_1x1conv:
            p["w3"] = 0.1 * jax.random.normal(ks[8], (1, 1, cin, cout), jnp.float32)
            p["b3"] = 0.1 * jax.random.normal(ks[9], (cout,), jnp.float32)
        return p

    N, H, W = 2, 16, 16
    configs = [
        dict(cin=4, cout=4, use_1x1conv=False, stride=(1, 1)),   # module defaults
        dict(cin=4, cout=8, use_1x1conv=True, stride=(1, 1)),    # projection skip path
    ]
    kp, kx = jax.random.split(key)
    for cfg in configs:
        params = make_params(kp, cfg["cin"], cfg["cout"], cfg["use_1x1conv"])
        x = jax.random.normal(kx, (N, cfg["cin"], H, W), jnp.float32)   # NCHW like PyTorch
        out = jax.block_until_ready(
            residual_forward(x, params, use_1x1conv=cfg["use_1x1conv"], stride=cfg["stride"]))
        sh, sw = cfg["stride"]
        exp_shape = (N, cfg["cout"], (H + 2 - 3) // sh + 1, (W + 2 - 3) // sw + 1)
        assert out.shape == exp_shape, (out.shape, exp_shape)

        ref = jax.block_until_ready(
            residual_ref(x, params, use_1x1conv=cfg["use_1x1conv"], stride=cfg["stride"]))
        err = float(jnp.max(jnp.abs(out - ref)))
        assert err < 1e-2, f"max abs error too large for {cfg}: {err}"

    print("KERNEL_OK")
</pallas_src>

<mosaic_0001>
module attributes {stable_mosaic.version = 11 : i64} {
  func.func @_conv3x3_kernel(%arg0: i32, %arg1: memref<1x16x16x4xf32, #tpu.memory_space<vmem>>, %arg2: memref<3x3x4x4xf32, #tpu.memory_space<vmem>>, %arg3: memref<1x16x16x4xf32, #tpu.memory_space<vmem>>, %arg4: memref<1x2x4xf32, #tpu.memory_space<vmem>>, %arg5: memref<18x18x4xf32, #tpu.memory_space<vmem>>) attributes {dimension_semantics = [#tpu.dimension_semantics<parallel>], iteration_bounds = array<i64: 2>, scalar_prefetch = 0 : i64, scratch_operands = 1 : i64, tpu.core_type = #tpu.core_type<tc>, window_params = [{transform_indices = @transform_0, window_bounds = array<i64: 1, 16, 16, 4>}, {pipeline_mode = #tpu.pipeline_mode<synchronous>, transform_indices = @transform_1, window_bounds = array<i64: 3, 3, 4, 4>}, {transform_indices = @transform_2, window_bounds = array<i64: 1, 16, 16, 4>}, {transform_indices = @transform_3, window_bounds = array<i64: 1, 2, 4>}]} {
    %cst = arith.constant 0.000000e+00 : f32
    %0 = vector.broadcast %cst : f32 to vector<1x18x4xf32>
    %cst_0 = arith.constant 0.000000e+00 : f32
    %1 = vector.broadcast %cst_0 : f32 to vector<18x1x4xf32>
    %c0 = arith.constant 0 : index
    %c0_1 = arith.constant 0 : index
    %c0_2 = arith.constant 0 : index
    %2 = vector.load %arg5[%c0, %c0_1, %c0_2] : memref<18x18x4xf32, #tpu.memory_space<vmem>>, vector<1x18x4xf32>
    tpu.vector_store %arg5[%c0, %c0_1, %c0_2], %0 {strides = array<i32>} : memref<18x18x4xf32, #tpu.memory_space<vmem>>, vector<1x18x4xf32>,
    %c17 = arith.constant 17 : index
    %c0_3 = arith.constant 0 : index
    %c0_4 = arith.constant 0 : index
    %3 = vector.load %arg5[%c17, %c0_3, %c0_4] : memref<18x18x4xf32, #tpu.memory_space<vmem>>, vector<1x18x4xf32>
    tpu.vector_store %arg5[%c17, %c0_3, %c0_4], %0 {strides = array<i32>} : memref<18x18x4xf32, #tpu.memory_space<vmem>>, vector<1x18x4xf32>,
    %c0_5 = arith.constant 0 : index
    %c0_6 = arith.constant 0 : index
    %c0_7 = arith.constant 0 : index
    %4 = vector.load %arg5[%c0_5, %c0_6, %c0_7] : memref<18x18x4xf32, #tpu.memory_space<vmem>>, vector<18x1x4xf32>
    tpu.vector_store %arg5[%c0_5, %c0_6, %c0_7], %1 {strides = array<i32>} : memref<18x18x4xf32, #tpu.memory_space<vmem>>, vector<18x1x4xf32>,
    %c0_8 = arith.constant 0 : index
    %c17_9 = arith.constant 17 : index
    %c0_10 = arith.constant 0 : index
    %5 = vector.load %arg5[%c0_8, %c17_9, %c0_10] : memref<18x18x4xf32, #tpu.memory_space<vmem>>, vector<18x1x4xf32>
    tpu.vector_store %arg5[%c0_8, %c17_9, %c0_10], %1 {strides = array<i32>} : memref<18x18x4xf32, #tpu.memory_space<vmem>>, vector<18x1x4xf32>,
    %c0_11 = arith.constant 0 : index
    %c0_12 = arith.constant 0 : index
    %c0_13 = arith.constant 0 : index
    %c0_14 = arith.constant 0 : index
    %6 = vector.load %arg1[%c0_11, %c0_12, %c0_13, %c0_14] : memref<1x16x16x4xf32, #tpu.memory_space<vmem>>, vector<1x16x16x4xf32>
    %7 = vector.shape_cast %6 : vector<1x16x16x4xf32> to vector<16x16x4xf32>
    %c1 = arith.constant 1 : index
    %c1_15 = arith.constant 1 : index
    %c0_16 = arith.constant 0 : index
    %8 = vector.load %arg5[%c1, %c1_15, %c0_16] : memref<18x18x4xf32, #tpu.memory_space<vmem>>, vector<16x16x4xf32>
    tpu.vector_store %arg5[%c1, %c1_15, %c0_16], %7 {strides = array<i32>} : memref<18x18x4xf32, #tpu.memory_space<vmem>>, vector<16x16x4xf32>,
    %cst_17 = arith.constant 0.000000e+00 : f32
    %9 = vector.broadcast %cst_17 : f32 to vector<256x4xf32>
    %c0_18 = arith.constant 0 : index
    %c0_19 = arith.constant 0 : index
    %c0_20 = arith.constant 0 : index
    %10 = vector.load %arg5[%c0_18, %c0_19, %c0_20] : memref<18x18x4xf32, #tpu.memory_space<vmem>>, vector<16x16x4xf32>
    %11 = vector.shape_cast %10 : vector<16x16x4xf32> to vector<256x4xf32>
    %c0_21 = arith.constant 0 : index
    %c0_22 = arith.constant 0 : index
    %c0_23 = arith.constant 0 : index
    %c0_24 = arith.constant 0 : index
    %12 = vector.load %arg2[%c0_21, %c0_22, %c0_23, %c0_24] : memref<3x3x4x4xf32, #tpu.memory_space<vmem>>, vector<1x1x4x4xf32>
    %13 = vector.shape_cast %12 : vector<1x1x4x4xf32> to vector<4x4xf32>
    %cst_25 = arith.constant dense<0.000000e+00> : vector<256x4xf32>
    %14 = tpu.matmul %11, %13, %cst_25 {dimension_numbers = #tpu.dot_dimension_numbers<[1], [0], [0], [1], [0, 0, 1, 1], [], []>} : vector<256x4xf32>, vector<4x4xf32>, vector<256x4xf32> -> vector<256x4xf32>
    %15 = arith.addf %9, %14 : vector<256x4xf32>
    %c0_26 = arith.constant 0 : index
    %c1_27 = arith.constant 1 : index
    %c0_28 = arith.constant 0 : index
    %16 = vector.load %arg5[%c0_26, %c1_27, %c0_28] : memref<18x18x4xf32, #tpu.memory_space<vmem>>, vector<16x16x4xf32>
    %17 = vector.shape_cast %16 : vector<16x16x4xf32> to vector<256x4xf32>
    %c0_29 = arith.constant 0 : index
    %c1_30 = arith.constant 1 : index
    %c0_31 = arith.constant 0 : index
    %c0_32 = arith.constant 0 : index
    %18 = vector.load %arg2[%c0_29, %c1_30, %c0_31, %c0_32] : memref<3x3x4x4xf32, #tpu.memory_space<vmem>>, vector<1x1x4x4xf32>
    %19 = vector.shape_cast %18 : vector<1x1x4x4xf32> to vector<4x4xf32>
    %cst_33 = arith.constant dense<0.000000e+00> : vector<256x4xf32>
    %20 = tpu.matmul %17, %19, %cst_33 {dimension_numbers = #tpu.dot_dimension_numbers<[1], [0], [0], [1], [0, 0, 1, 1], [], []>} : vector<256x4xf32>, vector<4x4xf32>, vector<256x4xf32> -> vector<256x4xf32>
    %21 = arith.addf %15, %20 : vector<256x4xf32>
    %c0_34 = arith.constant 0 : index
    %c2 = arith.constant 2 : index
    %c0_35 = arith.constant 0 : index
    %22 = vector.load %arg5[%c0_34, %c2, %c0_35] : memref<18x18x4xf32, #tpu.memory_space<vmem>>, vector<16x16x4xf32>
    %23 = vector.shape_cast %22 : vector<16x16x4xf32> to vector<256x4xf32>
    %c0_36 = arith.constant 0 : index
    %c2_37 = arith.constant 2 : index
    %c0_38 = arith.constant 0 : index
    %c0_39 = arith.constant 0 : index
    %24 = vector.load %arg2[%c0_36, %c2_37, %c0_38, %c0_39] : memref<3x3x4x4xf32, #tpu.memory_space<vmem>>, vector<1x1x4x4xf32>
    %25 = vector.shape_cast %24 : vector<1x1x4x4xf32> to vector<4x4xf32>
    %cst_40 = arith.constant dense<0.000000e+00> : vector<256x4xf32>
    %26 = tpu.matmul %23, %25, %cst_40 {dimension_numbers = #tpu.dot_dimension_numbers<[1], [0], [0], [1], [0, 0, 1, 1], [], []>} : vector<256x4xf32>, vector<4x4xf32>, vector<256x4xf32> -> vector<256x4xf32>
    %27 = arith.addf %21, %26 : vector<256x4xf32>
    %c1_41 = arith.constant 1 : index
    %c0_42 = arith.constant 0 : index
    %c0_43 = arith.constant 0 : index
    %28 = vector.load %arg5[%c1_41, %c0_42, %c0_43] : memref<18x18x4xf32, #tpu.memory_space<vmem>>, vector<16x16x4xf32>
    %29 = vector.shape_cast %28 : vector<16x16x4xf32> to vector<256x4xf32>
    %c1_44 = arith.constant 1 : index
    %c0_45 = arith.constant 0 : index
    %c0_46 = arith.constant 0 : index
    %c0_47 = arith.constant 0 : index
    %30 = vector.load %arg2[%c1_44, %c0_45, %c0_46, %c0_47] : memref<3x3x4x4xf32, #tpu.memory_space<vmem>>, vector<1x1x4x4xf32>
    %31 = vector.shape_cast %30 : vector<1x1x4x4xf32> to vector<4x4xf32>
    %cst_48 = arith.constant dense<0.000000e+00> : vector<256x4xf32>
    %32 = tpu.matmul %29, %31, %cst_48 {dimension_numbers = #tpu.dot_dimension_numbers<[1], [0], [0], [1], [0, 0, 1, 1], [], []>} : vector<256x4xf32>, vector<4x4xf32>, vector<256x4xf32> -> vector<256x4xf32>
    %33 = arith.addf %27, %32 : vector<256x4xf32>
    %c1_49 = arith.constant 1 : index
    %c1_50 = arith.constant 1 : index
    %c0_51 = arith.constant 0 : index
    %34 = vector.load %arg5[%c1_49, %c1_50, %c0_51] : memref<18x18x4xf32, #tpu.memory_space<vmem>>, vector<16x16x4xf32>
    %35 = vector.shape_cast %34 : vector<16x16x4xf32> to vector<256x4xf32>
    %c1_52 = arith.constant 1 : index
    %c1_53 = arith.constant 1 : index
    %c0_54 = arith.constant 0 : index
    %c0_55 = arith.constant 0 : index
    %36 = vector.load %arg2[%c1_52, %c1_53, %c0_54, %c0_55] : memref<3x3x4x4xf32, #tpu.memory_space<vmem>>, vector<1x1x4x4xf32>
    %37 = vector.shape_cast %36 : vector<1x1x4x4xf32> to vector<4x4xf32>
    %cst_56 = arith.constant dense<0.000000e+00> : vector<256x4xf32>
    %38 = tpu.matmul %35, %37, %cst_56 {dimension_numbers = #tpu.dot_dimension_numbers<[1], [0], [0], [1], [0, 0, 1, 1], [], []>} : vector<256x4xf32>, vector<4x4xf32>, vector<256x4xf32> -> vector<256x4xf32>
    %39 = arith.addf %33, %38 : vector<256x4xf32>
    %c1_57 = arith.constant 1 : index
    %c2_58 = arith.constant 2 : index
    %c0_59 = arith.constant 0 : index
    %40 = vector.load %arg5[%c1_57, %c2_58, %c0_59] : memref<18x18x4xf32, #tpu.memory_space<vmem>>, vector<16x16x4xf32>
    %41 = vector.shape_cast %40 : vector<16x16x4xf32> to vector<256x4xf32>
    %c1_60 = arith.constant 1 : index
    %c2_61 = arith.constant 2 : index
    %c0_62 = arith.constant 0 : index
    %c0_63 = arith.constant 0 : index
    %42 = vector.load %arg2[%c1_60, %c2_61, %c0_62, %c0_63] : memref<3x3x4x4xf32, #tpu.memory_space<vmem>>, vector<1x1x4x4xf32>
    %43 = vector.shape_cast %42 : vector<1x1x4x4xf32> to vector<4x4xf32>
    %cst_64 = arith.constant dense<0.000000e+00> : vector<256x4xf32>
    %44 = tpu.matmul %41, %43, %cst_64 {dimension_numbers = #tpu.dot_dimension_numbers<[1], [0], [0], [1], [0, 0, 1, 1], [], []>} : vector<256x4xf32>, vector<4x4xf32>, vector<256x4xf32> -> vector<256x4xf32>
    %45 = arith.addf %39, %44 : vector<256x4xf32>
    %c2_65 = arith.constant 2 : index
    %c0_66 = arith.constant 0 : index
    %c0_67 = arith.constant 0 : index
    %46 = vector.load %arg5[%c2_65, %c0_66, %c0_67] : memref<18x18x4xf32, #tpu.memory_space<vmem>>, vector<16x16x4xf32>
    %47 = vector.shape_cast %46 : vector<16x16x4xf32> to vector<256x4xf32>
    %c2_68 = arith.constant 2 : index
    %c0_69 = arith.constant 0 : index
    %c0_70 = arith.constant 0 : index
    %c0_71 = arith.constant 0 : index
    %48 = vector.load %arg2[%c2_68, %c0_69, %c0_70, %c0_71] : memref<3x3x4x4xf32, #tpu.memory_space<vmem>>, vector<1x1x4x4xf32>
    %49 = vector.shape_cast %48 : vector<1x1x4x4xf32> to vector<4x4xf32>
    %cst_72 = arith.constant dense<0.000000e+00> : vector<256x4xf32>
    %50 = tpu.matmul %47, %49, %cst_72 {dimension_numbers = #tpu.dot_dimension_numbers<[1], [0], [0], [1], [0, 0, 1, 1], [], []>} : vector<256x4xf32>, vector<4x4xf32>, vector<256x4xf32> -> vector<256x4xf32>
    %51 = arith.addf %45, %50 : vector<256x4xf32>
    %c2_73 = arith.constant 2 : index
    %c1_74 = arith.constant 1 : index
    %c0_75 = arith.constant 0 : index
    %52 = vector.load %arg5[%c2_73, %c1_74, %c0_75] : memref<18x18x4xf32, #tpu.memory_space<vmem>>, vector<16x16x4xf32>
    %53 = vector.shape_cast %52 : vector<16x16x4xf32> to vector<256x4xf32>
    %c2_76 = arith.constant 2 : index
    %c1_77 = arith.constant 1 : index
    %c0_78 = arith.constant 0 : index
    %c0_79 = arith.constant 0 : index
    %54 = vector.load %arg2[%c2_76, %c1_77, %c0_78, %c0_79] : memref<3x3x4x4xf32, #tpu.memory_space<vmem>>, vector<1x1x4x4xf32>
    %55 = vector.shape_cast %54 : vector<1x1x4x4xf32> to vector<4x4xf32>
    %cst_80 = arith.constant dense<0.000000e+00> : vector<256x4xf32>
    %56 = tpu.matmul %53, %55, %cst_80 {dimension_numbers = #tpu.dot_dimension_numbers<[1], [0], [0], [1], [0, 0, 1, 1], [], []>} : vector<256x4xf32>, vector<4x4xf32>, vector<256x4xf32> -> vector<256x4xf32>
    %57 = arith.addf %51, %56 : vector<256x4xf32>
    %c2_81 = arith.constant 2 : index
    %c2_82 = arith.constant 2 : index
    %c0_83 = arith.constant 0 : index
    %58 = vector.load %arg5[%c2_81, %c2_82, %c0_83] : memref<18x18x4xf32, #tpu.memory_space<vmem>>, vector<16x16x4xf32>
    %59 = vector.shape_cast %58 : vector<16x16x4xf32> to vector<256x4xf32>
    %c2_84 = arith.constant 2 : index
    %c2_85 = arith.constant 2 : index
    %c0_86 = arith.constant 0 : index
    %c0_87 = arith.constant 0 : index
    %60 = vector.load %arg2[%c2_84, %c2_85, %c0_86, %c0_87] : memref<3x3x4x4xf32, #tpu.memory_space<vmem>>, vector<1x1x4x4xf32>
    %61 = vector.shape_cast %60 : vector<1x1x4x4xf32> to vector<4x4xf32>
    %cst_88 = arith.constant dense<0.000000e+00> : vector<256x4xf32>
    %62 = tpu.matmul %59, %61, %cst_88 {dimension_numbers = #tpu.dot_dimension_numbers<[1], [0], [0], [1], [0, 0, 1, 1], [], []>} : vector<256x4xf32>, vector<4x4xf32>, vector<256x4xf32> -> vector<256x4xf32>
    %63 = arith.addf %57, %62 : vector<256x4xf32>
    %64 = vector.shape_cast %63 : vector<256x4xf32> to vector<16x16x4xf32>
    %c0_89 = arith.constant 0 : index
    %c0_90 = arith.constant 0 : index
    %c0_91 = arith.constant 0 : index
    %c0_92 = arith.constant 0 : index
    %65 = vector.load %arg3[%c0_89, %c0_90, %c0_91, %c0_92] : memref<1x16x16x4xf32, #tpu.memory_space<vmem>>, vector<1x16x16x4xf32>
    %66 = vector.shape_cast %65 : vector<1x16x16x4xf32> to vector<16x16x4xf32>
    %67 = vector.shape_cast %64 : vector<16x16x4xf32> to vector<1x16x16x4xf32>
    tpu.vector_store %arg3[%c0_89, %c0_90, %c0_91, %c0_92], %67 {strides = array<i32>} : memref<1x16x16x4xf32, #tpu.memory_space<vmem>>, vector<1x16x16x4xf32>,
    %cst_93 = arith.constant dense<0.000000e+00> : vector<4xf32>
    %68 = vector.multi_reduction <add>, %63, %cst_93 [0] : vector<256x4xf32> to vector<4xf32>
    %69 = vector.shape_cast %68 : vector<4xf32> to vector<1x4xf32>
    %c0_94 = arith.constant 0 : index
    %c0_95 = arith.constant 0 : index
    %c0_96 = arith.constant 0 : index
    %70 = vector.load %arg4[%c0_94, %c0_95, %c0_96] : memref<1x2x4xf32, #tpu.memory_space<vmem>>, vector<1x1x4xf32>
    %71 = vector.shape_cast %70 : vector<1x1x4xf32> to vector<1x4xf32>
    %72 = vector.shape_cast %69 : vector<1x4xf32> to vector<1x1x4xf32>
    tpu.vector_store %arg4[%c0_94, %c0_95, %c0_96], %72 {strides = array<i32>} : memref<1x2x4xf32, #tpu.memory_space<vmem>>, vector<1x1x4xf32>,
    %73 = arith.mulf %63, %63 : vector<256x4xf32>
    %cst_97 = arith.constant dense<0.000000e+00> : vector<4xf32>
    %74 = vector.multi_reduction <add>, %73, %cst_97 [0] : vector<256x4xf32> to vector<4xf32>
    %75 = vector.shape_cast %74 : vector<4xf32> to vector<1x4xf32>
    %c0_98 = arith.constant 0 : index
    %c1_99 = arith.constant 1 : index
    %c0_100 = arith.constant 0 : index
    %76 = vector.load %arg4[%c0_98, %c1_99, %c0_100] : memref<1x2x4xf32, #tpu.memory_space<vmem>>, vector<1x1x4xf32>
    %77 = vector.shape_cast %76 : vector<1x1x4xf32> to vector<1x4xf32>
    %78 = vector.shape_cast %75 : vector<1x4xf32> to vector<1x1x4xf32>
    tpu.vector_store %arg4[%c0_98, %c1_99, %c0_100], %78 {strides = array<i32>} : memref<1x2x4xf32, #tpu.memory_space<vmem>>, vector<1x1x4xf32>,
    return
  }
  func.func @transform_0(%arg0: i32) -> (i32, i32, i32, i32) {
    %c0_i32 = arith.constant 0 : i32
    %c0_i32_0 = arith.constant 0 : i32
    %c0_i32_1 = arith.constant 0 : i32
    %c0_i32_2 = arith.constant 0 : i32
    return %arg0, %c0_i32, %c0_i32_0, %c0_i32_1 : i32, i32, i32, i32
  }
  func.func @transform_1(%arg0: i32) -> (i32, i32, i32, i32) {
    %c0_i32 = arith.constant 0 : i32
    %c0_i32_0 = arith.constant 0 : i32
    %c0_i32_1 = arith.constant 0 : i32
    %c0_i32_2 = arith.constant 0 : i32
    %c0_i32_3 = arith.constant 0 : i32
    return %c0_i32, %c0_i32_0, %c0_i32_1, %c0_i32_2 : i32, i32, i32, i32
  }
  func.func @transform_2(%arg0: i32) -> (i32, i32, i32, i32) {
    %c0_i32 = arith.constant 0 : i32
    %c0_i32_0 = arith.constant 0 : i32
    %c0_i32_1 = arith.constant 0 : i32
    %c0_i32_2 = arith.constant 0 : i32
    return %arg0, %c0_i32, %c0_i32_0, %c0_i32_1 : i32, i32, i32, i32
  }
  func.func @transform_3(%arg0: i32) -> (i32, i32, i32) {
    %c0_i32 = arith.constant 0 : i32
    %c0_i32_0 = arith.constant 0 : i32
    %c0_i32_1 = arith.constant 0 : i32
    return %arg0, %c0_i32, %c0_i32_0 : i32, i32, i32
  }
}

</mosaic_0001>

<bundles_post_ra>
// kernel: tpu_custom_call.1
= control target key start
LH: loop header
LB: loop body
LE: loop exit
PB: predicated region body
PF: predicated region fallthrough
CT: control target
= control target key end

     0   :  { %9 = vsyncpa [#allocation4], 0  ;;  %s4833_s0 = inlined_call_operand.vmem [shape: f32[2,16,16,4], index: 0, kind: input, shape index: {}]   ;;  %s4834_s1 = inlined_call_operand.vmem [shape: f32[3,3,4,4], index: 1, kind: input, shape index: {}]   ;;  %s4835_s2 = inlined_call_operand.vmem [shape: f32[2,16,16,4], index: 2, kind: output, shape index: {0}]   ;;  %s4836_s3 = inlined_call_operand.hbm [shape: f32[2,2,4], index: 3, kind: output, shape index: {1}]  }
   0x1   :  { %11 = vsyncpa [#allocation4 + $0x1], 0  ;;  %s3492_s12 = smov 0   ;;  %s3494_s13 = smov 0  }
   0x2   :  { %s3496_s14 = smov 0   ;;  %s3498_s15 = smov 0  }
   0x3 LB: > { %s3513_s16 = sadd.s32 4294967295, %s3469_s15   ;;  %s3044_s17 = sadd.s32 4294967294, %s3469_s15   ;;  %s3469_s15 = sphi %s3498_s15, %s4972_s15   ;;  %s3465_s14 = sphi %s3496_s14, %s4971_s14   ;;  %s3461_s13 = sphi %s3494_s13, %s4970_s13   ;;  %s3457_s12 = sphi %s3492_s12, %s4969_s12  }
   0x4   : > { %s3517_s18 = sadd.s32 1, %s3469_s15   ;;  %s97_s19 = sadd.s32 1, %s3465_s14 }
   0x5   : > { %s94_s20 = ssub.s32 %s3469_s15, %s3517_s18  ;;  %p107_p0 = scmp.ne.s32.totalorder %s3465_s14, %s3461_s13 }
   0x6   : > { %p95_p1 = scmp.eq.s32.totalorder %s94_s20, 0  ;;  %p108_p2 = scmp.eq.s32.totalorder %s3513_s16, 1 }
   0x7   : > { %p113_p3 = scmp.ne.s32.totalorder %s3461_s13, %s3457_s12  ;;  %p114_p4 = scmp.eq.s32.totalorder %s3044_s17, 1 }
   0x8   : > { %s3528_s21 = scalar_select %p95_p1, %s3465_s14, %s97_s19  }
   0x9   : > { %p3530_p5 = por %p108_p2, %p107_p0  ;;  %p3534_p6 = por %p114_p4, %p113_p3 }
   0xa   : > { %p3047_p7 = scmp.ge.s32.totalorder %s3469_s15, 1  ;;  %p143_p8 = scmp.lt.s32.totalorder %s3469_s15, 3 }
   0xc   : > { %p144_p9 = pnand %p3047_p7, %p143_p8 }
   0xe   : > { %147 = sbr.rel (%p144_p9) target bundleno = 761 (0x2f9), region = 28 }
  0x13   : > { %v3053_v0 = vld [vmem:[%s4834_s1 + $0x4] sm:$0xf]  ;;  %vm456_vm0 = vcmask 1043456   ;;  %p172_p10 = scmp.lt.s32.totalorder %s3513_s16, 1  ;;  %vm182_vm1 = vcmask 31744   ;;  %v3471_v4 = vmov 0.0  }
  0x14   : > { %3364 = vmatpush.msk.msra.mxu1 %vm456_vm0, %v3053_v0  ;;  %3365 = vmatpush.msk.msra.mxu2 %vm456_vm0, %v3053_v0  ;;  %v3120_v1 = vld [vmem:[%s4834_s1 + $0x8] sm:$0xf]  ;;  %v3154_v2 = vld [vmem:[%s4834_s1 + $0xc] sm:$0xf]  ;;  %v325_v3 = vld [vmem:[%s4834_s1] sm:$0xf] }
  0x15   : > { %s3556_s5 = scalar_select %p172_p10, %s3513_s16, 1  ;;  %3366 = vmatpush.msk.msra.mxu3 %vm456_vm0, %v3053_v0  ;;  %183 = vst.msk [vmem:[#allocation2] sm:$0xff] %vm182_vm1, %v3471_v4  ;;  %v3188_v5 = vld [vmem:[%s4834_s1 + $0x10] sm:$0xf]  ;;  %vm185_vm2 = vcmask 25600   ;;  %3054 = vmatpush.msk.msra.mxu0 %vm456_vm0, %v3053_v0  ;;  %vm191_vm3 = vcmask 24576  }
  0x16   : > { %3121 = vmatpush.msk.msrb.mxu2 %vm456_vm0, %v3120_v1  ;;  %3087 = vmatpush.msk.msrb.mxu1 %vm456_vm0, %v325_v3  ;;  %184 = vst.msk [vmem:[#allocation2 + $0x8] sm:$0xff] %vm182_vm1, %v3471_v4  ;;  %v3256_v56 = vld [vmem:[%s4834_s1 + $0x18] sm:$0xf]  ;;  %v3290_v58 = vld [vmem:[%s4834_s1 + $0x1c] sm:$0xf]  ;;  %s3359_s7 = sshll.u32 %s3513_s16, 1 }
  0x17   : > { %3155 = vmatpush.msk.msrb.mxu3 %vm456_vm0, %v3154_v2  ;;  %s3362_s8 = sshll.u32 %s3556_s5, 8  ;;  %188 = vst.msk [vmem:[#allocation2 + $0x198] sm:$0xff] %vm182_vm1, %v3471_v4  ;;  %3189 = vmatpush.msk.msrb.mxu0 %vm456_vm0, %v3188_v5  ;;  %v3222_v59 = vld [vmem:[%s4834_s1 + $0x14] sm:$0xf]  ;;  %v3324_v0 = vld [vmem:[%s4834_s1 + $0x20] sm:$0xf]  ;;  %s2955_s10 = scalar_lea.hbm %s4836_s3, %s3359_s7 }
  0x18   : > { %s3578_s11 = scalar_lea.vmem %s4833_s0, %s3362_s8  ;;  %189 = vst.msk [vmem:[#allocation2 + $0x1a0] sm:$0xff] %vm182_vm1, %v3471_v4  ;;  %s4536_s4 = scalar_lea.vmem %s4835_s2, %s3362_s8 }
  0x19   : > { %v234_v6 = vld [vmem:[%s3578_s11 + $0x30] sm:$0xff]  ;;  %186 = vst.msk [vmem:[#allocation2 + $0x10] sm:$0x3] %vm185_vm2, %v3471_v4  ;;  %v235_v9 = vld [vmem:[%s3578_s11 + $0x38] sm:$0xff]  ;;  %v236_v13 = vld [vmem:[%s3578_s11 + $0x40] sm:$0xff]  ;;  %s169_s5 = sand.u32 1, %s3461_s13  }
  0x1a   : > { %v242_v7 = vld [vmem:[%s3578_s11 + $0x70] sm:$0xff]  ;;  %267 = vst.msk [vmem:[#allocation2 + $0x61] sm:$0xff] %vm182_vm1, %v234_v6  ;;  %v243_v10 = vld [vmem:[%s3578_s11 + $0x78] sm:$0xff]  ;;  %v244_v14 = vld [vmem:[%s3578_s11 + $0x80] sm:$0xff]  ;;  %s3048_s6 = sshll.u32 %s169_s5, 1  ;;  %s2959_s19 = sshll.u32 %s2955_s10, 4  ;;  %s2960_s19 = int_to_ptr.hbm [resolvable:$true] %s2959_s19 }
  0x1b   : > { %v250_v8 = vld [vmem:[%s3578_s11 + $0xb0] sm:$0xff]  ;;  %275 = vst.msk [vmem:[#allocation2 + $0xc1] sm:$0xff] %vm182_vm1, %v242_v7  ;;  %v251_v11 = vld [vmem:[%s3578_s11 + $0xb8] sm:$0xff]  ;;  %v252_v15 = vld [vmem:[%s3578_s11 + $0xc0] sm:$0xff]  ;;  %s2942_s16 = scalar_lea.sflag [#allocation4], %s169_s5  ;;  %s3421_s20 = sshra.s32 %s2960_s19, 4  ;;  %s3422_s20 = int_to_ptr.hbm [resolvable:$true] %s3421_s20 }
  0x1c   : > { %283 = vst.msk [vmem:[#allocation2 + $0x121] sm:$0xff] %vm182_vm1, %v250_v8  ;;  %v237_v17 = vld [vmem:[%s3578_s11 + $0x48] sm:$0xff]  ;;  %v228_v22 = vld [vmem:[%s3578_s11] sm:$0xff]  ;;  %v238_v24 = vld [vmem:[%s3578_s11 + $0x50] sm:$0xff]  ;;  %s3423_s24 = scalar_lea.hbm %s3422_s20, 2  ;;  %s3427_s27 = scalar_lea.hbm %s4836_s3, 4 }
  0x1d   : > { %268 = vst.msk [vmem:[#allocation2 + $0x69] sm:$0xff] %vm182_vm1, %v235_v9  ;;  %v326_v12 = vld [vmem:[#allocation2 + $0x1] sm:$0xff]  ;;  %v246_v25 = vld [vmem:[%s3578_s11 + $0x90] sm:$0xff]  ;;  %v239_v31 = vld [vmem:[%s3578_s11 + $0x58] sm:$0xff]  ;;  %p3424_p11 = scmp.ne.s32.totalorder %s3422_s20, %s3423_s24  ;;  %p3428_p0 = scmp.lt.s32.totalorder %s3422_s20, %s4836_s3 }
  0x1e   : > { %276 = vst.msk [vmem:[#allocation2 + $0xc9] sm:$0xff] %vm182_vm1, %v243_v10  ;;  %3055 = vmatmul.msk.f32.vlgmr.msra.gmra.mxu0 %vm182_vm1, %v326_v12  ;;  %v245_v19 = vld [vmem:[%s3578_s11 + $0x88] sm:$0xff]  ;;  %v254_v29 = vld [vmem:[%s3578_s11 + $0xd0] sm:$0xff]  ;;  %v247_v32 = vld [vmem:[%s3578_s11 + $0x98] sm:$0xff]  ;;  %p3429_p1 = scmp.lt.s32.totalorder %s3427_s27, %s3423_s24 }
  0x1f   : > { %284 = vst.msk [vmem:[#allocation2 + $0x129] sm:$0xff] %vm182_vm1, %v251_v11  ;;  %v253_v23 = vld [vmem:[%s3578_s11 + $0xc8] sm:$0xff]  ;;  %v230_v33 = vld [vmem:[%s3578_s11 + $0x10] sm:$0xff]  ;;  %v255_v34 = vld [vmem:[%s3578_s11 + $0xd8] sm:$0xff]  ;;  %3325 = vmatpush.msk.msra.mxu0 %vm456_vm0, %v3324_v0  ;;  %p3425_p12 = pnand %p3424_p11, %p3530_p5 }
  0x20   : > { %269 = vst.msk [vmem:[#allocation2 + $0x79] sm:$0xff] %vm182_vm1, %v236_v13  ;;  %v327_v21 = vld [vmem:[#allocation2 + $0x9] sm:$0xff]  ;;  %v240_v36 = vld [vmem:[%s3578_s11 + $0x60] sm:$0xff]  ;;  %v231_v39 = vld [vmem:[%s3578_s11 + $0x18] sm:$0xff]  ;;  %p3430_p2 = por %p3429_p1, %p3428_p0 }
  0x21   : > { %v3602_v16 = vld [vmem:[#allocation2 + $0x61] sm:$0xff]  ;;  %277 = vst.msk [vmem:[#allocation2 + $0xd9] sm:$0xff] %vm182_vm1, %v244_v14  ;;  %p3426_p13 = pneg %p3425_p12 }
  0x22   : > { %3063 = vmatmul.msk.f32.vlgmr.msra.gmra.mxu1 %vm182_vm1, %v3602_v16  ;;  %v3608_v18 = vld [vmem:[#allocation2 + $0xc1] sm:$0xff]  ;;  %190 = vst.msk [vmem:[#allocation2 + $0x1a8] sm:$0x3] %vm185_vm2, %v3471_v4 }
  0x23   : > { %3071 = vmatmul.msk.f32.vlgmr.msra.gmra.mxu2 %vm182_vm1, %v3608_v18  ;;  %v3615_v20 = vld [vmem:[#allocation2 + $0x121] sm:$0xff]  ;;  %285 = vst.msk [vmem:[#allocation2 + $0x139] sm:$0xff] %vm182_vm1, %v252_v15  ;;  %3223 = vmatpush.msk.msra.mxu1 %vm456_vm0, %v3222_v59  ;;  %p3431_p3 = pnand %p3430_p2, %p3426_p13 }
  0x24   : > { %3079 = vmatmul.msk.f32.vlgmr.msra.gmra.mxu3 %vm182_vm1, %v3615_v20  ;;  %270 = vst.msk [vmem:[#allocation2 + $0x81] sm:$0xff] %vm182_vm1, %v237_v17  ;;  %v3628_v26 = vld [vmem:[#allocation2 + $0x69] sm:$0xff]  ;;  %v248_v37 = vld [vmem:[%s3578_s11 + $0xa0] sm:$0xff]  ;;  %3257 = vmatpush.msk.msra.mxu2 %vm456_vm0, %v3256_v56 }
  0x25   : > { %278 = vst.msk [vmem:[#allocation2 + $0xe1] sm:$0xff] %vm182_vm1, %v245_v19  ;;  %v229_v27 = vld [vmem:[%s3578_s11 + $0x8] sm:$0xff]  ;;  %v256_v41 = vld [vmem:[%s3578_s11 + $0xe0] sm:$0xff]  ;;  %3291 = vmatpush.msk.msra.mxu3 %vm456_vm0, %v3290_v58 }
  0x26   : > { %3056 = vmatmul.msk.f32.gmra.mxu0 %vm182_vm1, %v327_v21  ;;  %261 = vst.msk [vmem:[#allocation2 + $0x19] sm:$0xff] %vm182_vm1, %v228_v22  ;;  %v3632_v28 = vld [vmem:[#allocation2 + $0xc9] sm:$0xff]  ;;  %v232_v46 = vld [vmem:[%s3578_s11 + $0x20] sm:$0xff] }
  0x27   : > { %286 = vst.msk [vmem:[#allocation2 + $0x141] sm:$0xff] %vm182_vm1, %v253_v23  ;;  %v3636_v30 = vld [vmem:[#allocation2 + $0x129] sm:$0xff]  ;;  %v3660_v38 = vld [vmem:[#allocation2 + $0x79] sm:$0xff] }
  0x28   : > { %271 = vst.msk [vmem:[#allocation2 + $0x91] sm:$0xff] %vm182_vm1, %v238_v24  ;;  %v3664_v40 = vld [vmem:[#allocation2 + $0xd9] sm:$0xff]  ;;  %v241_v43 = vld [vmem:[%s3578_s11 + $0x68] sm:$0xff] }
  0x29   : > { %279 = vst.msk [vmem:[#allocation2 + $0xf1] sm:$0xff] %vm182_vm1, %v246_v25  ;;  %v249_v44 = vld [vmem:[%s3578_s11 + $0xa8] sm:$0xff] }
  0x2a   : > { %3064 = vmatmul.msk.f32.gmra.mxu1 %vm182_vm1, %v3628_v26  ;;  %262 = vst.msk [vmem:[#allocation2 + $0x21] sm:$0xff] %vm182_vm1, %v229_v27  ;;  %v3668_v42 = vld [vmem:[#allocation2 + $0x139] sm:$0xff]  ;;  %v257_v47 = vld [vmem:[%s3578_s11 + $0xe8] sm:$0xff] }
  0x2b   : > { %3072 = vmatmul.msk.f32.gmra.mxu2 %vm182_vm1, %v3632_v28  ;;  %287 = vst.msk [vmem:[#allocation2 + $0x151] sm:$0xff] %vm182_vm1, %v254_v29  ;;  %v3690_v48 = vld [vmem:[#allocation2 + $0x81] sm:$0xff] }
  0x2c   : > { %3080 = vmatmul.msk.f32.gmra.mxu3 %vm182_vm1, %v3636_v30  ;;  %272 = vst.msk [vmem:[#allocation2 + $0x99] sm:$0xff] %vm182_vm1, %v239_v31  ;;  %v3693_v49 = vld [vmem:[#allocation2 + $0xe1] sm:$0xff] }
  0x2d   : > { %v3652_v35 = vld [vmem:[#allocation2 + $0x19] sm:$0xff]  ;;  %280 = vst.msk [vmem:[#allocation2 + $0xf9] sm:$0xff] %vm182_vm1, %v247_v32  ;;  %v233_v7 = vld [vmem:[%s3578_s11 + $0x28] sm:$0xff] }
  0x2e   : > { %3057 = vmatmul.msk.f32.gmra.mxu0 %vm182_vm1, %v3652_v35  ;;  %263 = vst.msk [vmem:[#allocation2 + $0x31] sm:$0xff] %vm182_vm1, %v230_v33  ;;  %v3695_v50 = vld [vmem:[#allocation2 + $0x141] sm:$0xff] }
  0x2f   : > { %288 = vst.msk [vmem:[#allocation2 + $0x159] sm:$0xff] %vm182_vm1, %v255_v34  ;;  %v3715_v52 = vld [vmem:[#allocation2 + $0x91] sm:$0xff]  ;;  %v785_v9 = vld [vmem:[#allocation2 + $0x2] sm:$0xff] }
  0x30   : > { %273 = vst.msk [vmem:[#allocation2 + $0xa9] sm:$0xff] %vm182_vm1, %v240_v36  ;;  %v3719_v53 = vld [vmem:[#allocation2 + $0xf1] sm:$0xff]  ;;  %v294_v12 = vld [vmem:[#allocation2 + $0x8] sm:$0xff] }
  0x31   : > { %281 = vst.msk [vmem:[#allocation2 + $0x109] sm:$0xff] %vm182_vm1, %v248_v37  ;;  %v3678_v45 = vld [vmem:[#allocation2 + $0x21] sm:$0xff] }
  0x32   : > { %3065 = vmatmul.msk.f32.gmra.mxu1 %vm182_vm1, %v3660_v38  ;;  %264 = vst.msk [vmem:[#allocation2 + $0x39] sm:$0xff] %vm182_vm1, %v231_v39  ;;  %v3723_v54 = vld [vmem:[#allocation2 + $0x151] sm:$0xff]  ;;  %v1064_v14 = vld [vmem:[#allocation2 + $0x20] sm:$0xff]  ;;  %v3925_v31 = vld [vmem:[#allocation2 + $0x68] sm:$0xff] }
  0x33   : > { %3073 = vmatmul.msk.f32.gmra.mxu2 %vm182_vm1, %v3664_v40  ;;  %289 = vst.msk [vmem:[#allocation2 + $0x169] sm:$0xff] %vm182_vm1, %v256_v41  ;;  %v3747_v57 = vld [vmem:[#allocation2 + $0x99] sm:$0xff]  ;;  %v3939_v34 = vld [vmem:[#allocation2 + $0x62] sm:$0xff] }
  0x34   : > { %3081 = vmatmul.msk.f32.gmra.mxu3 %vm182_vm1, %v3668_v42  ;;  %274 = vst.msk [vmem:[#allocation2 + $0xb1] sm:$0xff] %vm182_vm1, %v241_v43  ;;  %v3761_v60 = vld [vmem:[#allocation2 + $0xf9] sm:$0xff] }
  0x35   : > { %282 = vst.msk [vmem:[#allocation2 + $0x111] sm:$0xff] %vm182_vm1, %v249_v44  ;;  %v3701_v51 = vld [vmem:[#allocation2 + $0x31] sm:$0xff]  ;;  %v3961_v43 = vld [vmem:[#allocation2 + $0x80] sm:$0xff] }
  0x36   : > { %3058 = vmatmul.msk.f32.gmra.mxu0 %vm182_vm1, %v3678_v45  ;;  %265 = vst.msk [vmem:[#allocation2 + $0x49] sm:$0xff] %vm182_vm1, %v232_v46  ;;  %v3767_v61 = vld [vmem:[#allocation2 + $0x159] sm:$0xff] }
  0x37   : > { %290 = vst.msk [vmem:[#allocation2 + $0x171] sm:$0xff] %vm182_vm1, %v257_v47  ;;  %v3791_v63 = vld [vmem:[#allocation2 + $0xa9] sm:$0xff]  ;;  %v3977_v46 = vld [vmem:[#allocation2 + $0x7a] sm:$0xff] }
  0x38   : > { %192 = vst.msk [vmem:[#allocation2] sm:$0x1] %vm191_vm3, %v3471_v4  ;;  %v3798_v1 = vld [vmem:[#allocation2 + $0x109] sm:$0xff]  ;;  %v3999_v0 = vld [vmem:[#allocation2 + $0x98] sm:$0xff] }
  0x39   : > { %193 = vst.msk [vmem:[#allocation2 + $0x18] sm:$0x1] %vm191_vm3, %v3471_v4  ;;  %v3733_v55 = vld [vmem:[#allocation2 + $0x39] sm:$0xff] }
  0x3a   : > { %3066 = vmatmul.msk.f32.gmra.mxu1 %vm182_vm1, %v3690_v48  ;;  %194 = vst.msk [vmem:[#allocation2 + $0x30] sm:$0x1] %vm191_vm3, %v3471_v4  ;;  %v3803_v2 = vld [vmem:[#allocation2 + $0x169] sm:$0xff]  ;;  %v3878_v19 = vld [vmem:[#allocation2 + $0x38] sm:$0xff] }
  0x3b   : > { %3074 = vmatmul.msk.f32.gmra.mxu2 %vm182_vm1, %v3693_v49  ;;  %195 = vst.msk [vmem:[#allocation2 + $0x48] sm:$0x1] %vm191_vm3, %v3471_v4  ;;  %v3823_v3 = vld [vmem:[#allocation2 + $0xb1] sm:$0xff] }
  0x3c   : > { %3082 = vmatmul.msk.f32.gmra.mxu3 %vm182_vm1, %v3695_v50  ;;  %196 = vst.msk [vmem:[#allocation2 + $0x60] sm:$0x1] %vm191_vm3, %v3471_v4  ;;  %v3827_v5 = vld [vmem:[#allocation2 + $0x111] sm:$0xff] }
  0x3d   : > { %197 = vst.msk [vmem:[#allocation2 + $0x78] sm:$0x1] %vm191_vm3, %v3471_v4  ;;  %v3777_v62 = vld [vmem:[#allocation2 + $0x49] sm:$0xff]  ;;  %v3887_v21 = vld [vmem:[#allocation2 + $0x32] sm:$0xff] }
  0x3e   : > { %3059 = vmatmul.msk.f32.gmra.mxu0 %vm182_vm1, %v3701_v51  ;;  %198 = vst.msk [vmem:[#allocation2 + $0x90] sm:$0x1] %vm191_vm3, %v3471_v4  ;;  %v3831_v6 = vld [vmem:[#allocation2 + $0x171] sm:$0xff] }
  0x3f   : > { %199 = vst.msk [vmem:[#allocation2 + $0xa8] sm:$0x1] %vm191_vm3, %v3471_v4  ;;  %v293_v8 = vld [vmem:[#allocation2] sm:$0xff] }
  0x40   : > { %200 = vst.msk [vmem:[#allocation2 + $0xc0] sm:$0x1] %vm191_vm3, %v3471_v4  ;;  %v1063_v10 = vld [vmem:[#allocation2 + $0x18] sm:$0xff] }
  0x41   : > { %201 = vst.msk [vmem:[#allocation2 + $0xd8] sm:$0x1] %vm191_vm3, %v3471_v4  ;;  %v3867_v15 = vld [vmem:[#allocation2 + $0x30] sm:$0xff] }
  0x42   : > { %3067 = vmatmul.msk.f32.gmra.mxu1 %vm182_vm1, %v3715_v52  ;;  %202 = vst.msk [vmem:[#allocation2 + $0xf0] sm:$0x1] %vm191_vm3, %v3471_v4  ;;  %v3889_v22 = vld [vmem:[#allocation2 + $0x48] sm:$0xff] }
  0x43   : > { %3075 = vmatmul.msk.f32.gmra.mxu2 %vm182_vm1, %v3719_v53  ;;  %203 = vst.msk [vmem:[#allocation2 + $0x108] sm:$0x1] %vm191_vm3, %v3471_v4  ;;  %v3913_v27 = vld [vmem:[#allocation2 + $0x60] sm:$0xff] }
  0x44   : > { %3083 = vmatmul.msk.f32.gmra.mxu3 %vm182_vm1, %v3723_v54  ;;  %204 = vst.msk [vmem:[#allocation2 + $0x120] sm:$0x1] %vm191_vm3, %v3471_v4 }
  0x45   : > { %205 = vst.msk [vmem:[#allocation2 + $0x138] sm:$0x1] %vm191_vm3, %v3471_v4  ;;  %v3979_v47 = vld [vmem:[#allocation2 + $0x90] sm:$0xff] }
  0x46   : > { %3060 = vmatmul.msk.f32.gmra.mxu0 %vm182_vm1, %v3733_v55  ;;  %206 = vst.msk [vmem:[#allocation2 + $0x150] sm:$0x1] %vm191_vm3, %v3471_v4 }
  0x47   : > { %207 = vst.msk [vmem:[#allocation2 + $0x168] sm:$0x1] %vm191_vm3, %v3471_v4 }
  0x48   : > { %208 = vst.msk [vmem:[#allocation2 + $0x180] sm:$0x1] %vm191_vm3, %v3471_v4 }
  0x49   : > { %209 = vst.msk [vmem:[#allocation2 + $0x198] sm:$0x1] %vm191_vm3, %v3471_v4 }
  0x4a   : > { %3068 = vmatmul.msk.f32.gmra.mxu1 %vm182_vm1, %v3747_v57  ;;  %210 = vst.msk [vmem:[#allocation2 + $0x11] sm:$0x1] %vm191_vm3, %v3471_v4 }
  0x4b   : > { %3076 = vmatmul.msk.f32.gmra.mxu2 %vm182_vm1, %v3761_v60  ;;  %211 = vst.msk [vmem:[#allocation2 + $0x29] sm:$0x1] %vm191_vm3, %v3471_v4 }
  0x4c   : > { %3084 = vmatmul.msk.f32.gmra.mxu3 %vm182_vm1, %v3767_v61  ;;  %212 = vst.msk [vmem:[#allocation2 + $0x41] sm:$0x1] %vm191_vm3, %v3471_v4 }
  0x4d   : > { %213 = vst.msk [vmem:[#allocation2 + $0x59] sm:$0x1] %vm191_vm3, %v3471_v4 }
  0x4e   : > { %3061 = vmatmul.msk.f32.gmra.mxu0 %vm182_vm1, %v3777_v62  ;;  %214 = vst.msk [vmem:[#allocation2 + $0x71] sm:$0x1] %vm191_vm3, %v3471_v4 }
  0x4f   : > { %215 = vst.msk [vmem:[#allocation2 + $0x89] sm:$0x1] %vm191_vm3, %v3471_v4 }
  0x50   : > { %216 = vst.msk [vmem:[#allocation2 + $0xa1] sm:$0x1] %vm191_vm3, %v3471_v4 }
  0x51   : > { %217 = vst.msk [vmem:[#allocation2 + $0xb9] sm:$0x1] %vm191_vm3, %v3471_v4  ;;  %v786_v13 = vld [vmem:[#allocation2 + $0xa] sm:$0xff] }
  0x52   : > { %3069 = vmatmul.msk.f32.gmra.mxu1 %vm182_vm1, %v3791_v63  ;;  %218 = vst.msk [vmem:[#allocation2 + $0xd1] sm:$0x1] %vm191_vm3, %v3471_v4  ;;  %v3876_v17 = vld [vmem:[#allocation2 + $0x22] sm:$0xff] }
  0x53   : > { %3077 = vmatmul.msk.f32.gmra.mxu2 %vm182_vm1, %v3798_v1  ;;  %219 = vst.msk [vmem:[#allocation2 + $0xe9] sm:$0x1] %vm191_vm3, %v3471_v4  ;;  %v3899_v23 = vld [vmem:[#allocation2 + $0x3a] sm:$0xff] }
  0x54   : > { %3085 = vmatmul.msk.f32.gmra.mxu3 %vm182_vm1, %v3803_v2  ;;  %220 = vst.msk [vmem:[#allocation2 + $0x101] sm:$0x1] %vm191_vm3, %v3471_v4 }
  0x55   : > { %221 = vst.msk [vmem:[#allocation2 + $0x119] sm:$0x1] %vm191_vm3, %v3471_v4  ;;  %v3957_v39 = vld [vmem:[#allocation2 + $0x6a] sm:$0xff] }
  0x56   : > { %222 = vst.msk [vmem:[#allocation2 + $0x131] sm:$0x1] %vm191_vm3, %v3471_v4  ;;  %v3997_v59 = vld [vmem:[#allocation2 + $0x82] sm:$0xff] }
  0x57   : > { %223 = vst.msk [vmem:[#allocation2 + $0x149] sm:$0x1] %vm191_vm3, %v3471_v4 }
  0x58   : > { %224 = vst.msk [vmem:[#allocation2 + $0x161] sm:$0x1] %vm191_vm3, %v3471_v4 }
  0x59   : > { %225 = vst.msk [vmem:[#allocation2 + $0x179] sm:$0x1] %vm191_vm3, %v3471_v4 }
  0x5a   : > { %3070 = vmatmul.msk.f32.gmra.mxu1 %vm182_vm1, %v3823_v3  ;;  %226 = vst.msk [vmem:[#allocation2 + $0x191] sm:$0x1] %vm191_vm3, %v3471_v4 }
  0x5b   : > { %3078 = vmatmul.msk.f32.gmra.mxu2 %vm182_vm1, %v3827_v5  ;;  %227 = vst.msk [vmem:[#allocation2 + $0x1a9] sm:$0x1] %vm191_vm3, %v3471_v4  ;;  %v3865_v4 = vld [vmem:[#allocation2 + $0x1a] sm:$0xff] }
  0x5c   : > { %3086 = vmatmul.msk.f32.gmra.mxu3 %vm182_vm1, %v3831_v6  ;;  %266 = vst.msk [vmem:[#allocation2 + $0x51] sm:$0xff] %vm182_vm1, %v233_v7 }
  0x5d   : > { %4865 = vst [vmem:[#allocation6_spill] sm:$0xff] %v3939_v34 }
  0x5e   : > { %4868 = vst [vmem:[#allocation9_spill] sm:$0xff] %v3957_v39 }
  0x5f   : > { %4869 = vst [vmem:[#allocation10_spill] sm:$0xff] %v3961_v43 }
  0x60   : > { %4871 = vst [vmem:[#allocation12_spill] sm:$0xff] %v3977_v46 }
  0x61   : > { %4872 = vst [vmem:[#allocation13_spill] sm:$0xff] %v3979_v47 }
  0x62   : > { %3088 = vmatmul.msk.f32.vlgmr.msrb.gmra.mxu1 %vm182_vm1, %v293_v8  ;;  %4874 = vst [vmem:[#allocation15_spill] sm:$0xff] %v3997_v59 }
  0x63   : > { %3122 = vmatmul.msk.f32.vlgmr.msrb.gmra.mxu2 %vm182_vm1, %v785_v9  ;;  %v3856_v11 = vld [vmem:[#allocation2 + $0x51] sm:$0xff]  ;;  %4875 = vst [vmem:[#allocation16_spill] sm:$0xff] %v3999_v0 }
  0x64   : > { %3156 = vmatmul.msk.f32.vlgmr.msrb.gmra.mxu3 %vm182_vm1, %v1063_v10  ;;  %3062 = vmatmul.msk.f32.gmra.mxu0 %vm182_vm1, %v3856_v11  ;;  %v3901_v24 = vld [vmem:[#allocation2 + $0x50] sm:$0xff] }
  0x65   : > { %v3911_v25 = vld [vmem:[#allocation2 + $0x4a] sm:$0xff]  ;;  %v3923_v29 = vld [vmem:[#allocation2 + $0x52] sm:$0xff] }
  0x6a   : > { %3089 = vmatmul.msk.f32.gmra.mxu1 %vm182_vm1, %v294_v12  ;;  %v4019_v12 = vld [vmem:[#allocation2 + $0xa8] sm:$0xff] }
  0x6b   : > { %3123 = vmatmul.msk.f32.gmra.mxu2 %vm182_vm1, %v786_v13  ;;  %4878 = vst [vmem:[#allocation19_spill] sm:$0xff] %v4019_v12 }
  0x6c   : > { %3157 = vmatmul.msk.f32.gmra.mxu3 %vm182_vm1, %v1064_v14  ;;  %3190 = vmatmul.msk.f32.vlgmr.msrb.gmra.mxu0 %vm182_vm1, %v3652_v35  ;;  %v3941_v35 = vld [vmem:[#allocation2 + $0x78] sm:$0xff] }
  0x6d   : > { %4866 = vst [vmem:[#allocation7_spill] sm:$0xff] %v3941_v35 }
  0x72   : > { %3090 = vmatmul.msk.f32.gmra.mxu1 %vm182_vm1, %v1063_v10  ;;  %v4017_v10 = vld [vmem:[#allocation2 + $0x92] sm:$0xff] }
  0x73   : > { %3124 = vmatmul.msk.f32.gmra.mxu2 %vm182_vm1, %v3865_v4  ;;  %4877 = vst [vmem:[#allocation18_spill] sm:$0xff] %v4017_v10 }
  0x74   : > { %3158 = vmatmul.msk.f32.gmra.mxu3 %vm182_vm1, %v3867_v15  ;;  %3191 = vmatmul.msk.f32.gmra.mxu0 %vm182_vm1, %v3678_v45 }
  0x7a   : > { %3091 = vmatmul.msk.f32.gmra.mxu1 %vm182_vm1, %v1064_v14 }
  0x7b   : > { %3125 = vmatmul.msk.f32.gmra.mxu2 %vm182_vm1, %v3876_v17 }
  0x7c   : > { %3159 = vmatmul.msk.f32.gmra.mxu3 %vm182_vm1, %v3878_v19  ;;  %3192 = vmatmul.msk.f32.gmra.mxu0 %vm182_vm1, %v3701_v51 }
  0x82   : > { %3092 = vmatmul.msk.f32.gmra.mxu1 %vm182_vm1, %v3867_v15 }
  0x83   : > { %3126 = vmatmul.msk.f32.gmra.mxu2 %vm182_vm1, %v3887_v21 }
  0x84   : > { %3160 = vmatmul.msk.f32.gmra.mxu3 %vm182_vm1, %v3889_v22  ;;  %3193 = vmatmul.msk.f32.gmra.mxu0 %vm182_vm1, %v3733_v55 }
  0x8a   : > { %3093 = vmatmul.msk.f32.gmra.mxu1 %vm182_vm1, %v3878_v19 }
  0x8b   : > { %3127 = vmatmul.msk.f32.gmra.mxu2 %vm182_vm1, %v3899_v23 }
  0x8c   : > { %3161 = vmatmul.msk.f32.gmra.mxu3 %vm182_vm1, %v3901_v24  ;;  %3194 = vmatmul.msk.f32.gmra.mxu0 %vm182_vm1, %v3777_v62 }
  0x92   : > { %3094 = vmatmul.msk.f32.gmra.mxu1 %vm182_vm1, %v3889_v22 }
  0x93   : > { %3128 = vmatmul.msk.f32.gmra.mxu2 %vm182_vm1, %v3911_v25 }
  0x94   : > { %3162 = vmatmul.msk.f32.gmra.mxu3 %vm182_vm1, %v3913_v27  ;;  %3195 = vmatmul.msk.f32.gmra.mxu0 %vm182_vm1, %v3856_v11 }
  0x9a   : > { %3095 = vmatmul.msk.f32.gmra.mxu1 %vm182_vm1, %v3901_v24 }
  0x9b   : > { %3129 = vmatmul.msk.f32.gmra.mxu2 %vm182_vm1, %v3923_v29  ;;  %v3933_v32 = vpop.f32.mrf.mxu0 }
  0x9c   : > { %3163 = vmatmul.msk.f32.gmra.mxu3 %vm182_vm1, %v3925_v31  ;;  %3196 = vmatmul.msk.f32.gmra.mxu0 %vm182_vm1, %v3602_v16 }
  0x9f   : > { %v3937_v33 = vpop.f32.mrf.mxu1 }
  0xa2   : > { %3096 = vmatmul.msk.f32.gmra.mxu1 %vm182_vm1, %v3913_v27 }
  0xa3   : > { %3130 = vmatmul.msk.f32.gmra.mxu2 %vm182_vm1, %v3939_v34  ;;  %v3959_v41 = vpop.f32.mrf.mxu0  ;;  %v4112_v34 = vld [vmem:[#allocation2 + $0xe0] sm:$0xff] }
  0xa4   : > { %3164 = vmatmul.msk.f32.gmra.mxu3 %vm182_vm1, %v3941_v35  ;;  %3197 = vmatmul.msk.f32.gmra.mxu0 %vm182_vm1, %v3628_v26 }
  0xa6   : > { %v3949_v36 = vpop.f32.mrf.mxu2 }
  0xa7   : > { %v3953_v16 = vpop.f32.mrf.mxu1  ;;  %v3955_v37 = vpop.f32.mrf.mxu3 }
  0xa8   : > { %4867 = vst [vmem:[#allocation8_spill] sm:$0xff] %v3955_v37  ;;  %v4057_v37 = vld [vmem:[#allocation2 + $0xaa] sm:$0xff] }
  0xa9   : > { %4883 = vst [vmem:[#allocation24_spill] sm:$0xff] %v4057_v37 }
  0xaa   : > { %3097 = vmatmul.msk.f32.gmra.mxu1 %vm182_vm1, %v3925_v31 }
  0xab   : > { %3131 = vmatmul.msk.f32.gmra.mxu2 %vm182_vm1, %v3957_v39  ;;  %v3983_v51 = vpop.f32.mrf.mxu0  ;;  %v4095_v39 = vld [vmem:[#allocation2 + $0xd8] sm:$0xff] }
  0xac   : > { %3165 = vmatmul.msk.f32.gmra.mxu3 %vm182_vm1, %v3961_v43  ;;  %3198 = vmatmul.msk.f32.gmra.mxu0 %vm182_vm1, %v3660_v38 }
  0xae   : > { %v3969_v26 = vpop.f32.mrf.mxu2 }
  0xaf   : > { %v3973_v44 = vpop.f32.mrf.mxu1  ;;  %v3975_v45 = vpop.f32.mrf.mxu3 }
  0xb0   : > { %4870 = vst [vmem:[#allocation11_spill] sm:$0xff] %v3975_v45  ;;  %v4039_v45 = vld [vmem:[#allocation2 + $0xb0] sm:$0xff] }
  0xb1   : > { %4881 = vst [vmem:[#allocation22_spill] sm:$0xff] %v4039_v45 }
  0xb2   : > { %3098 = vmatmul.msk.f32.gmra.mxu1 %vm182_vm1, %v3941_v35  ;;  %v4108_v35 = vld [vmem:[#allocation2 + $0xca] sm:$0xff] }
  0xb3   : > { %3132 = vmatmul.msk.f32.gmra.mxu2 %vm182_vm1, %v3977_v46  ;;  %v4007_v7 = vpop.f32.mrf.mxu0  ;;  %v4077_v46 = vld [vmem:[#allocation2 + $0xc8] sm:$0xff] }
  0xb4   : > { %3166 = vmatmul.msk.f32.gmra.mxu3 %vm182_vm1, %v3979_v47  ;;  %3199 = vmatmul.msk.f32.gmra.mxu0 %vm182_vm1, %v3690_v48 }
  0xb6   : > { %v3989_v38 = vpop.f32.mrf.mxu2 }
  0xb7   : > { %v3993_v56 = vpop.f32.mrf.mxu1  ;;  %v3995_v58 = vpop.f32.mrf.mxu3 }
  0xb8   : > { %4873 = vst [vmem:[#allocation14_spill] sm:$0xff] %v3995_v58  ;;  %v4037_v58 = vld [vmem:[#allocation2 + $0x9a] sm:$0xff] }
  0xb9   : > { %4880 = vst [vmem:[#allocation21_spill] sm:$0xff] %v4037_v58 }
  0xba   : > { %3099 = vmatmul.msk.f32.gmra.mxu1 %vm182_vm1, %v3961_v43  ;;  %v4093_v43 = vld [vmem:[#allocation2 + $0xc2] sm:$0xff] }
  0xbb   : > { %3133 = vmatmul.msk.f32.gmra.mxu2 %vm182_vm1, %v3997_v59  ;;  %4890 = vst [vmem:[#allocation31_spill] sm:$0xff] %v4093_v43 }
  0xbc   : > { %3167 = vmatmul.msk.f32.gmra.mxu3 %vm182_vm1, %v3999_v0  ;;  %3200 = vmatmul.msk.f32.gmra.mxu0 %vm182_vm1, %v3715_v52  ;;  %v4029_v52 = vpop.f32.mrf.mxu0 }
  0xbe   : > { %v4009_v48 = vpop.f32.mrf.mxu2 }
  0xbf   : > { %v4013_v8 = vpop.f32.mrf.mxu1  ;;  %v4015_v9 = vpop.f32.mrf.mxu3 }
  0xc0   : > { %4876 = vst [vmem:[#allocation17_spill] sm:$0xff] %v4015_v9 }
  0xc2   : > { %3100 = vmatmul.msk.f32.gmra.mxu1 %vm182_vm1, %v3979_v47  ;;  %v4075_v47 = vld [vmem:[#allocation2 + $0xb2] sm:$0xff] }
  0xc3   : > { %3134 = vmatmul.msk.f32.gmra.mxu2 %vm182_vm1, %v4017_v10  ;;  %4887 = vst [vmem:[#allocation28_spill] sm:$0xff] %v4075_v47 }
  0xc4   : > { %3168 = vmatmul.msk.f32.gmra.mxu3 %vm182_vm1, %v4019_v12  ;;  %3201 = vmatmul.msk.f32.gmra.mxu0 %vm182_vm1, %v3747_v57  ;;  %v4055_v59 = vpop.f32.mrf.mxu0 }
  0xc6   : > { %v4027_v13 = vpop.f32.mrf.mxu2 }
  0xc7   : > { %v4033_v14 = vpop.f32.mrf.mxu1  ;;  %v4035_v9 = vpop.f32.mrf.mxu3 }
  0xc8   : > { %4879 = vst [vmem:[#allocation20_spill] sm:$0xff] %v4035_v9 }
  0xca   : > { %3101 = vmatmul.msk.f32.gmra.mxu1 %vm182_vm1, %v3999_v0  ;;  %v4059_v0 = vld [vmem:[#allocation2 + $0xc0] sm:$0xff] }
  0xcb   : > { %3135 = vmatmul.msk.f32.gmra.mxu2 %vm182_vm1, %v4037_v58  ;;  %4884 = vst [vmem:[#allocation25_spill] sm:$0xff] %v4059_v0 }
  0xcc   : > { %3169 = vmatmul.msk.f32.gmra.mxu3 %vm182_vm1, %v4039_v45  ;;  %3202 = vmatmul.msk.f32.gmra.mxu0 %vm182_vm1, %v3791_v63 }
  0xce   : > { %v4047_v10 = vpop.f32.mrf.mxu2 }
  0xcf   : > { %v4051_v57 = vpop.f32.mrf.mxu1  ;;  %v4053_v9 = vpop.f32.mrf.mxu3 }
  0xd0   : > { %4882 = vst [vmem:[#allocation23_spill] sm:$0xff] %v4053_v9 }
  0xd2   : > { %3102 = vmatmul.msk.f32.gmra.mxu1 %vm182_vm1, %v4019_v12  ;;  %v4079_v12 = vpop.f32.mrf.mxu0 }
  0xd3   : > { %3136 = vmatmul.msk.f32.gmra.mxu2 %vm182_vm1, %v4057_v37 }
  0xd4   : > { %3170 = vmatmul.msk.f32.gmra.mxu3 %vm182_vm1, %v4059_v0  ;;  %3203 = vmatmul.msk.f32.gmra.mxu0 %vm182_vm1, %v3823_v3 }
  0xd6   : > { %v4067_v63 = vpop.f32.mrf.mxu2 }
  0xd7   : > { %4885 = vst [vmem:[#allocation26_spill] sm:$0xff] %v4067_v63  ;;  %v4071_v9 = vpop.f32.mrf.mxu1  ;;  %v4073_v58 = vpop.f32.mrf.mxu3 }
  0xd8   : > { %4886 = vst [vmem:[#allocation27_spill] sm:$0xff] %v4073_v58 }
  0xda   : > { %3103 = vmatmul.msk.f32.gmra.mxu1 %vm182_vm1, %v4039_v45 }
  0xdb   : > { %3137 = vmatmul.msk.f32.gmra.mxu2 %vm182_vm1, %v4075_v47 }
  0xdc   : > { %3171 = vmatmul.msk.f32.gmra.mxu3 %vm182_vm1, %v4077_v46  ;;  %3204 = vmatmul.msk.f32.gmra.mxu0 %vm182_vm1, %v3608_v18 }
  0xde   : > { %v4087_v3 = vpop.f32.mrf.mxu2 }
  0xdf   : > { %4888 = vst [vmem:[#allocation29_spill] sm:$0xff] %v4087_v3  ;;  %v4091_v58 = vpop.f32.mrf.mxu3  ;;  %v689_v37 = vpop.f32.mrf.mxu1 }
  0xe0   : > { %4889 = vst [vmem:[#allocation30_spill] sm:$0xff] %v4091_v58  ;;  %v690_v18 = vadd.f32 %v689_v37, %v3933_v32 }
  0xe1   : > { %v4101_v47 = vpop.f32.mrf.mxu0 }
  0xe2   : > { %3104 = vmatmul.msk.f32.gmra.mxu1 %vm182_vm1, %v4059_v0 }
  0xe3   : > { %3138 = vmatmul.msk.f32.gmra.mxu2 %vm182_vm1, %v4093_v43  ;;  %v4129_v43 = vld [vmem:[#allocation2 + $0xf0] sm:$0xff] }
  0xe4   : > { %3172 = vmatmul.msk.f32.gmra.mxu3 %vm182_vm1, %v4095_v39  ;;  %3205 = vmatmul.msk.f32.gmra.mxu0 %vm182_vm1, %v3632_v28 }
  0xe6   : > { %v935_v45 = vpop.f32.mrf.mxu2 }
  0xe7   : > { %v1031_v58 = vadd.f32 %v935_v45, %v690_v18  ;;  %v692_v3 = vpop.f32.mrf.mxu1  ;;  %v1213_v63 = vpop.f32.mrf.mxu3  ;;  %v4125_v18 = vld [vmem:[#allocation2 + $0xda] sm:$0xff] }
  0xe8   : > { %v693_v28 = vadd.f32 %v692_v3, %v3959_v41 }
  0xe9   : > { %v4110_v0 = vadd.f32 %v1213_v63, %v1031_v58  ;;  %v4118_v32 = vpop.f32.mrf.mxu0 }
  0xea   : > { %3105 = vmatmul.msk.f32.gmra.mxu1 %vm182_vm1, %v4077_v46  ;;  %4892 = vst [vmem:[#allocation33_spill] sm:$0xff] %v4118_v32  ;;  %v4146_v32 = vld [vmem:[#allocation2 + $0xf8] sm:$0xff] }
  0xeb   : > { %4891 = vst [vmem:[#allocation32_spill] sm:$0xff] %v4110_v0  ;;  %3139 = vmatmul.msk.f32.gmra.mxu2 %vm182_vm1, %v4108_v35 }
  0xec   : > { %3173 = vmatmul.msk.f32.gmra.mxu3 %vm182_vm1, %v4112_v34  ;;  %3206 = vmatmul.msk.f32.gmra.mxu0 %vm182_vm1, %v3664_v40 }
  0xee   : > { %v938_v37 = vpop.f32.mrf.mxu2 }
  0xef   : > { %v1032_v45 = vadd.f32 %v938_v37, %v693_v28  ;;  %v695_v58 = vpop.f32.mrf.mxu1  ;;  %v1216_v63 = vpop.f32.mrf.mxu3 }
  0xf0   : > { %v696_v40 = vadd.f32 %v695_v58, %v3983_v51 }
  0xf1   : > { %v4127_v0 = vadd.f32 %v1216_v63, %v1032_v45  ;;  %v4135_v41 = vpop.f32.mrf.mxu0  ;;  %v4142_v63 = vld [vmem:[#allocation2 + $0xe2] sm:$0xff] }
  0xf2   : > { %3106 = vmatmul.msk.f32.gmra.mxu1 %vm182_vm1, %v4095_v39  ;;  %4894 = vst [vmem:[#allocation35_spill] sm:$0xff] %v4135_v41  ;;  %v4163_v41 = vld [vmem:[#allocation2 + $0x108] sm:$0xff] }
  0xf3   : > { %4893 = vst [vmem:[#allocation34_spill] sm:$0xff] %v4127_v0  ;;  %3140 = vmatmul.msk.f32.gmra.mxu2 %vm182_vm1, %v4125_v18 }
  0xf4   : > { %3174 = vmatmul.msk.f32.gmra.mxu3 %vm182_vm1, %v4129_v43  ;;  %3207 = vmatmul.msk.f32.gmra.mxu0 %vm182_vm1, %v3693_v49 }
  0xf6   : > { %v941_v3 = vpop.f32.mrf.mxu2 }
  0xf7   : > { %v1033_v28 = vadd.f32 %v941_v3, %v696_v40  ;;  %v698_v37 = vpop.f32.mrf.mxu1  ;;  %v1219_v45 = vpop.f32.mrf.mxu3 }
  0xf8   : > { %v699_v49 = vadd.f32 %v698_v37, %v4007_v7 }
  0xf9   : > { %v4144_v0 = vadd.f32 %v1219_v45, %v1033_v28  ;;  %v4152_v51 = vpop.f32.mrf.mxu0  ;;  %v4159_v45 = vld [vmem:[#allocation2 + $0xf2] sm:$0xff] }
  0xfa   : > { %3107 = vmatmul.msk.f32.gmra.mxu1 %vm182_vm1, %v4112_v34  ;;  %4896 = vst [vmem:[#allocation37_spill] sm:$0xff] %v4152_v51  ;;  %v4180_v51 = vld [vmem:[#allocation2 + $0x110] sm:$0xff] }
  0xfb   : > { %4895 = vst [vmem:[#allocation36_spill] sm:$0xff] %v4144_v0  ;;  %3141 = vmatmul.msk.f32.gmra.mxu2 %vm182_vm1, %v4142_v63 }
  0xfc   : > { %3175 = vmatmul.msk.f32.gmra.mxu3 %vm182_vm1, %v4146_v32  ;;  %3208 = vmatmul.msk.f32.gmra.mxu0 %vm182_vm1, %v3719_v53 }
  0xfe   : > { %v944_v58 = vpop.f32.mrf.mxu2 }
  0xff   : > { %v1034_v40 = vadd.f32 %v944_v58, %v699_v49  ;;  %v701_v3 = vpop.f32.mrf.mxu1  ;;  %v1222_v28 = vpop.f32.mrf.mxu3 }
 0x100   : > { %v702_v53 = vadd.f32 %v701_v3, %v4029_v52 }
 0x101   : > { %v4161_v0 = vadd.f32 %v1222_v28, %v1034_v40  ;;  %v4169_v7 = vpop.f32.mrf.mxu0  ;;  %v4176_v28 = vld [vmem:[#allocation2 + $0xfa] sm:$0xff] }
 0x102   : > { %3108 = vmatmul.msk.f32.gmra.mxu1 %vm182_vm1, %v4129_v43  ;;  %4898 = vst [vmem:[#allocation39_spill] sm:$0xff] %v4169_v7  ;;  %v4197_v7 = vld [vmem:[#allocation2 + $0x120] sm:$0xff] }
 0x103   : > { %4897 = vst [vmem:[#allocation38_spill] sm:$0xff] %v4161_v0  ;;  %3142 = vmatmul.msk.f32.gmra.mxu2 %vm182_vm1, %v4159_v45 }
 0x104   : > { %3176 = vmatmul.msk.f32.gmra.mxu3 %vm182_vm1, %v4163_v41  ;;  %3209 = vmatmul.msk.f32.gmra.mxu0 %vm182_vm1, %v3761_v60 }
 0x106   : > { %v947_v37 = vpop.f32.mrf.mxu2 }
 0x107   : > { %v1035_v49 = vadd.f32 %v947_v37, %v702_v53  ;;  %v704_v58 = vpop.f32.mrf.mxu1  ;;  %v1225_v40 = vpop.f32.mrf.mxu3 }
 0x108   : > { %v705_v60 = vadd.f32 %v704_v58, %v4055_v59 }
 0x109   : > { %v4178_v0 = vadd.f32 %v1225_v40, %v1035_v49  ;;  %v4186_v52 = vpop.f32.mrf.mxu0  ;;  %v4193_v40 = vld [vmem:[#allocation2 + $0x10a] sm:$0xff] }
 0x10a   : > { %3109 = vmatmul.msk.f32.gmra.mxu1 %vm182_vm1, %v4146_v32  ;;  %4900 = vst [vmem:[#allocation41_spill] sm:$0xff] %v4186_v52  ;;  %v4214_v52 = vld [vmem:[#allocation2 + $0x128] sm:$0xff] }
 0x10b   : > { %4899 = vst [vmem:[#allocation40_spill] sm:$0xff] %v4178_v0  ;;  %3143 = vmatmul.msk.f32.gmra.mxu2 %vm182_vm1, %v4176_v28 }
 0x10c   : > { %3177 = vmatmul.msk.f32.gmra.mxu3 %vm182_vm1, %v4180_v51  ;;  %3210 = vmatmul.msk.f32.gmra.mxu0 %vm182_vm1, %v3798_v1 }
 0x10e   : > { %v950_v3 = vpop.f32.mrf.mxu2 }
 0x10f   : > { %v1036_v53 = vadd.f32 %v950_v3, %v705_v60  ;;  %v707_v37 = vpop.f32.mrf.mxu1  ;;  %v1228_v49 = vpop.f32.mrf.mxu3 }
 0x110   : > { %v708_v1 = vadd.f32 %v707_v37, %v4079_v12 }
 0x111   : > { %v4195_v0 = vadd.f32 %v1228_v49, %v1036_v53  ;;  %v4203_v59 = vpop.f32.mrf.mxu0  ;;  %v4210_v49 = vld [vmem:[#allocation2 + $0x112] sm:$0xff] }
 0x112   : > { %3110 = vmatmul.msk.f32.gmra.mxu1 %vm182_vm1, %v4163_v41  ;;  %4902 = vst [vmem:[#allocation43_spill] sm:$0xff] %v4203_v59  ;;  %v1087_v59 = vld [vmem:[#allocation2 + $0x138] sm:$0xff] }
 0x113   : > { %4901 = vst [vmem:[#allocation42_spill] sm:$0xff] %v4195_v0  ;;  %3144 = vmatmul.msk.f32.gmra.mxu2 %vm182_vm1, %v4193_v40 }
 0x114   : > { %3178 = vmatmul.msk.f32.gmra.mxu3 %vm182_vm1, %v4197_v7  ;;  %3211 = vmatmul.msk.f32.gmra.mxu0 %vm182_vm1, %v3827_v5 }
 0x116   : > { %v953_v58 = vpop.f32.mrf.mxu2 }
 0x117   : > { %v1037_v60 = vadd.f32 %v953_v58, %v708_v1  ;;  %v710_v3 = vpop.f32.mrf.mxu1  ;;  %v1231_v53 = vpop.f32.mrf.mxu3 }
 0x118   : > { %v711_v5 = vadd.f32 %v710_v3, %v4101_v47 }
 0x119   : > { %v4212_v0 = vadd.f32 %v1231_v53, %v1037_v60  ;;  %v4220_v12 = vpop.f32.mrf.mxu0  ;;  %v4227_v53 = vld [vmem:[#allocation2 + $0x122] sm:$0xff] }
 0x11a   : > { %3111 = vmatmul.msk.f32.gmra.mxu1 %vm182_vm1, %v4180_v51  ;;  %4904 = vst [vmem:[#allocation45_spill] sm:$0xff] %v4220_v12 }
 0x11b   : > { %4903 = vst [vmem:[#allocation44_spill] sm:$0xff] %v4212_v0  ;;  %3145 = vmatmul.msk.f32.gmra.mxu2 %vm182_vm1, %v4210_v49 }
 0x11c   : > { %3179 = vmatmul.msk.f32.gmra.mxu3 %vm182_vm1, %v4214_v52  ;;  %3212 = vmatmul.msk.f32.gmra.mxu0 %vm182_vm1, %v3615_v20 }
 0x11e   : > { %v956_v37 = vpop.f32.mrf.mxu2 }
 0x11f   : > { %v1038_v1 = vadd.f32 %v956_v37, %v711_v5  ;;  %v713_v58 = vpop.f32.mrf.mxu1  ;;  %v1234_v60 = vpop.f32.mrf.mxu3 }
 0x120   : > { %v714_v20 = vadd.f32 %v713_v58, %v3937_v33  ;;  %v258_v58 = vld [vmem:[%s3578_s11 + $0xf0] sm:$0xff] }
 0x121   : > { %v4229_v0 = vadd.f32 %v1234_v60, %v1038_v1  ;;  %v4235_v12 = vpop.f32.mrf.mxu0  ;;  %v4241_v1 = vld [vmem:[#allocation2 + $0x12a] sm:$0xff]  ;;  %291 = vst.msk [vmem:[#allocation2 + $0x181] sm:$0xff] %vm182_vm1, %v258_v58 }
 0x122   : > { %3112 = vmatmul.msk.f32.gmra.mxu1 %vm182_vm1, %v4197_v7  ;;  %4906 = vst [vmem:[#allocation47_spill] sm:$0xff] %v4235_v12 }
 0x123   : > { %4905 = vst [vmem:[#allocation46_spill] sm:$0xff] %v4229_v0  ;;  %3146 = vmatmul.msk.f32.gmra.mxu2 %vm182_vm1, %v4227_v53  ;;  %v1088_v0 = vld [vmem:[#allocation2 + $0x140] sm:$0xff] }
 0x124   : > { %3180 = vmatmul.msk.f32.gmra.mxu3 %vm182_vm1, %v1087_v59  ;;  %3213 = vmatmul.msk.f32.gmra.mxu0 %vm182_vm1, %v3636_v30  ;;  %4907 = vst [vmem:[#allocation48_spill] sm:$0xff] %v4241_v1 }
 0x126   : > { %v959_v47 = vpop.f32.mrf.mxu2 }
 0x127   : > { %v1039_v3 = vadd.f32 %v959_v47, %v714_v20  ;;  %v716_v5 = vpop.f32.mrf.mxu1  ;;  %v1237_v37 = vpop.f32.mrf.mxu3 }
 0x128   : > { %v717_v30 = vadd.f32 %v716_v5, %v3953_v16 }
 0x129   : > { %v4243_v60 = vadd.f32 %v1237_v37, %v1039_v3  ;;  %v4249_v12 = vpop.f32.mrf.mxu0  ;;  %v811_v37 = vld [vmem:[#allocation2 + $0x13a] sm:$0xff] }
 0x12a   : > { %3113 = vmatmul.msk.f32.gmra.mxu1 %vm182_vm1, %v4214_v52 }
 0x12b   : > { %4908 = vst [vmem:[#allocation49_spill] sm:$0xff] %v4243_v60  ;;  %3147 = vmatmul.msk.f32.gmra.mxu2 %vm182_vm1, %v4241_v1  ;;  %v1089_v1 = vld [vmem:[#allocation2 + $0x150] sm:$0xff] }
 0x12c   : > { %3181 = vmatmul.msk.f32.gmra.mxu3 %vm182_vm1, %v1088_v0  ;;  %3214 = vmatmul.msk.f32.gmra.mxu0 %vm182_vm1, %v3668_v42 }
 0x12e   : > { %v962_v33 = vpop.f32.mrf.mxu2 }
 0x12f   : > { %v1040_v20 = vadd.f32 %v962_v33, %v717_v30  ;;  %v719_v47 = vpop.f32.mrf.mxu1  ;;  %v1240_v3 = vpop.f32.mrf.mxu3  ;;  %v259_v30 = vld [vmem:[%s3578_s11 + $0xf8] sm:$0xff]  ;;  %s171_s11 = scalar_lea.vmem [#allocation3], %s3048_s6 }
 0x130   : > { %v720_v5 = vadd.f32 %v719_v47, %v3973_v44  ;;  %292 = vst.msk [vmem:[#allocation2 + $0x189] sm:$0xff] %vm182_vm1, %v259_v30  ;;  %v813_v30 = vld [vmem:[#allocation2 + $0x152] sm:$0xff]  ;;  %s2957_s17 = sshll.u32 %s171_s11, 4  ;;  %s2958_s17 = int_to_ptr.vmem [resolvable:$true] %s2957_s17 }
 0x131   : > { %v4257_v60 = vadd.f32 %v1240_v3, %v1040_v20  ;;  %v4261_v16 = vpop.f32.mrf.mxu0  ;;  %v812_v3 = vld [vmem:[#allocation2 + $0x142] sm:$0xff] }
 0x132   : > { %3114 = vmatmul.msk.f32.gmra.mxu1 %vm182_vm1, %v1087_v59  ;;  %4909 = vst [vmem:[#allocation50_spill] sm:$0xff] %v4261_v16 }
 0x133   : > { %3148 = vmatmul.msk.f32.gmra.mxu2 %vm182_vm1, %v811_v37  ;;  %v1090_v37 = vld [vmem:[#allocation2 + $0x158] sm:$0xff] }
 0x134   : > { %3182 = vmatmul.msk.f32.gmra.mxu3 %vm182_vm1, %v1089_v1  ;;  %3215 = vmatmul.msk.f32.gmra.mxu0 %vm182_vm1, %v3695_v50 }
 0x136   : > { %v965_v42 = vpop.f32.mrf.mxu2 }
 0x137   : > { %v1041_v33 = vadd.f32 %v965_v42, %v720_v5  ;;  %v722_v58 = vpop.f32.mrf.mxu1  ;;  %v1243_v20 = vpop.f32.mrf.mxu3 }
 0x138   : > { %v723_v44 = vadd.f32 %v722_v58, %v3993_v56 }
 0x139   : > { %v4269_v59 = vadd.f32 %v1243_v20, %v1041_v33  ;;  %v4273_v16 = vpop.f32.mrf.mxu0  ;;  %v1091_v20 = vld [vmem:[#allocation2 + $0x168] sm:$0xff] }
 0x13a   : > { %3115 = vmatmul.msk.f32.gmra.mxu1 %vm182_vm1, %v1088_v0 }
 0x13b   : > { %3149 = vmatmul.msk.f32.gmra.mxu2 %vm182_vm1, %v812_v3 }
 0x13c   : > { %3183 = vmatmul.msk.f32.gmra.mxu3 %vm182_vm1, %v1090_v37  ;;  %3216 = vmatmul.msk.f32.gmra.mxu0 %vm182_vm1, %v3723_v54 }
 0x13e   : > { %v968_v50 = vpop.f32.mrf.mxu2 }
 0x13f   : > { %v1042_v47 = vadd.f32 %v968_v50, %v723_v44  ;;  %v725_v5 = vpop.f32.mrf.mxu1  ;;  %v1246_v42 = vpop.f32.mrf.mxu3  ;;  %v814_v50 = vld [vmem:[#allocation2 + $0x15a] sm:$0xff] }
 0x140   : > { %v726_v56 = vadd.f32 %v725_v5, %v4013_v8 }
 0x141   : > { %v4279_v33 = vadd.f32 %v1246_v42, %v1042_v47  ;;  %v4283_v0 = vpop.f32.mrf.mxu0  ;;  %v1092_v42 = vld [vmem:[#allocation2 + $0x170] sm:$0xff] }
 0x142   : > { %3116 = vmatmul.msk.f32.gmra.mxu1 %vm182_vm1, %v1089_v1 }
 0x143   : > { %3150 = vmatmul.msk.f32.gmra.mxu2 %vm182_vm1, %v813_v30 }
 0x144   : > { %3184 = vmatmul.msk.f32.gmra.mxu3 %vm182_vm1, %v1091_v20  ;;  %3217 = vmatmul.msk.f32.gmra.mxu0 %vm182_vm1, %v3767_v61 }
 0x146   : > { %v971_v58 = vpop.f32.mrf.mxu2 }
 0x147   : > { %v1043_v54 = vadd.f32 %v971_v58, %v726_v56  ;;  %v728_v3 = vpop.f32.mrf.mxu1  ;;  %v1249_v44 = vpop.f32.mrf.mxu3  ;;  %v815_v58 = vld [vmem:[#allocation2 + $0x16a] sm:$0xff] }
 0x148   : > { %v729_v8 = vadd.f32 %v728_v3, %v4033_v14 }
 0x149   : > { %v4289_v47 = vadd.f32 %v1249_v44, %v1043_v54  ;;  %v4293_v1 = vpop.f32.mrf.mxu0  ;;  %v1093_v44 = vld [vmem:[#allocation2 + $0x180] sm:$0xff] }
 0x14a   : > { %3117 = vmatmul.msk.f32.gmra.mxu1 %vm182_vm1, %v1090_v37 }
 0x14b   : > { %3151 = vmatmul.msk.f32.gmra.mxu2 %vm182_vm1, %v814_v50 }
 0x14c   : > { %3185 = vmatmul.msk.f32.gmra.mxu3 %vm182_vm1, %v1092_v42  ;;  %3218 = vmatmul.msk.f32.gmra.mxu0 %vm182_vm1, %v3803_v2 }
 0x14e   : > { %v974_v5 = vpop.f32.mrf.mxu2 }
 0x14f   : > { %v1044_v61 = vadd.f32 %v974_v5, %v729_v8  ;;  %v731_v30 = vpop.f32.mrf.mxu1  ;;  %v1252_v56 = vpop.f32.mrf.mxu3  ;;  %v816_v5 = vld [vmem:[#allocation2 + $0x172] sm:$0xff] }
 0x150   : > { %v732_v14 = vadd.f32 %v731_v30, %v4051_v57  ;;  %v1371_v57 = vld [vmem:[#allocation2 + $0x181] sm:$0xff] }
 0x151   : > { %v4299_v54 = vadd.f32 %v1252_v56, %v1044_v61  ;;  %v4303_v37 = vpop.f32.mrf.mxu0  ;;  %v1094_v56 = vld [vmem:[#allocation2 + $0x188] sm:$0xff] }
 0x152   : > { %3118 = vmatmul.msk.f32.gmra.mxu1 %vm182_vm1, %v1091_v20 }
 0x153   : > { %3152 = vmatmul.msk.f32.gmra.mxu2 %vm182_vm1, %v815_v58 }
 0x154   : > { %3186 = vmatmul.msk.f32.gmra.mxu3 %vm182_vm1, %v1093_v44  ;;  %3219 = vmatmul.msk.f32.gmra.mxu0 %vm182_vm1, %v3831_v6 }
 0x156   : > { %v977_v3 = vpop.f32.mrf.mxu2 }
 0x157   : > { %v1045_v2 = vadd.f32 %v977_v3, %v732_v14  ;;  %v734_v50 = vpop.f32.mrf.mxu1  ;;  %v1255_v8 = vpop.f32.mrf.mxu3 }
 0x158   : > { %v735_v30 = vadd.f32 %v734_v50, %v4071_v9 }
 0x159   : > { %v4309_v61 = vadd.f32 %v1255_v8, %v1045_v2  ;;  %v4313_v20 = vpop.f32.mrf.mxu0  ;;  %v2176_v2 = vld [vmem:[#allocation2 + $0x31] sm:$0xff]  ;;  %v1372_v8 = vld [vmem:[#allocation2 + $0x189] sm:$0xff] }
 0x15a   : > { %3119 = vmatmul.msk.f32.gmra.mxu1 %vm182_vm1, %v1092_v42 }
 0x15b   : > { %3153 = vmatmul.msk.f32.gmra.mxu2 %vm182_vm1, %v816_v5 }
 0x15c   : > { %3187 = vmatmul.msk.f32.gmra.mxu3 %vm182_vm1, %v1094_v56  ;;  %3220 = vmatmul.msk.f32.gmra.mxu0 %vm182_vm1, %v1371_v57 }
 0x15e   : > { %v980_v58 = vpop.f32.mrf.mxu2 }
 0x15f   : > { %v1046_v6 = vadd.f32 %v980_v58, %v735_v30  ;;  %v737_v44 = vpop.f32.mrf.mxu1  ;;  %v1258_v14 = vpop.f32.mrf.mxu3 }
 0x160   : > { %v738_v9 = vadd.f32 %v737_v44, %v3949_v36 }
 0x161   : > { %v4318_v3 = vadd.f32 %v1258_v14, %v1046_v6  ;;  %v4324_v42 = vpop.f32.mrf.mxu0 }
 0x162   : > { %3224 = vmatmul.msk.f32.vlgmr.msra.gmra.mxu1 %vm182_vm1, %v3865_v4 }
 0x163   : > { %3258 = vmatmul.msk.f32.vlgmr.msra.gmra.mxu2 %vm182_vm1, %v3867_v15 }
 0x164   : > { %3292 = vmatmul.msk.f32.vlgmr.msra.gmra.mxu3 %vm182_vm1, %v2176_v2  ;;  %3221 = vmatmul.msk.f32.gmra.mxu0 %vm182_vm1, %v1372_v8 }
 0x166   : > { %v983_v50 = vpop.f32.mrf.mxu2 }
 0x167   : > { %v1047_v5 = vadd.f32 %v983_v50, %v738_v9  ;;  %v740_v56 = vpop.f32.mrf.mxu1  ;;  %v1261_v57 = vpop.f32.mrf.mxu3 }
 0x168   : > { %v741_v15 = vadd.f32 %v740_v56, %v3969_v26 }
 0x169   : > { %v4329_v30 = vadd.f32 %v1261_v57, %v1047_v5  ;;  %v4335_v4 = vpop.f32.mrf.mxu0 }
 0x16a   : > { %3225 = vmatmul.msk.f32.gmra.mxu1 %vm182_vm1, %v3876_v17 }
 0x16b   : > { %3259 = vmatmul.msk.f32.gmra.mxu2 %vm182_vm1, %v3878_v19 }
 0x16c   : > { %3293 = vmatmul.msk.f32.gmra.mxu3 %vm182_vm1, %v3733_v55  ;;  %3326 = vmatmul.msk.f32.vlgmr.msra.gmra.mxu0 %vm182_vm1, %v3887_v21 }
 0x16e   : > { %v986_v36 = vpop.f32.mrf.mxu2 }
 0x16f   : > { %v1048_v58 = vadd.f32 %v986_v36, %v741_v15  ;;  %v743_v6 = vpop.f32.mrf.mxu1  ;;  %v1264_v44 = vpop.f32.mrf.mxu3 }
 0x170   : > { %v744_v55 = vadd.f32 %v743_v6, %v3989_v38  ;;  %v2181_v6 = vld [vmem:[#allocation2 + $0x69] sm:$0xff] }
 0x171   : > { %v4342_v14 = vadd.f32 %v1264_v44, %v1048_v58  ;;  %v4348_v17 = vpop.f32.mrf.mxu0  ;;  %v4910_v44 = vld [vmem:[#allocation6_spill] sm:$0xff] }
 0x172   : > { %3226 = vmatmul.msk.f32.gmra.mxu1 %vm182_vm1, %v3887_v21 }
 0x173   : > { %3260 = vmatmul.msk.f32.gmra.mxu2 %vm182_vm1, %v3889_v22 }
 0x174   : > { %3294 = vmatmul.msk.f32.gmra.mxu3 %vm182_vm1, %v3777_v62  ;;  %3327 = vmatmul.msk.f32.gmra.mxu0 %vm182_vm1, %v3899_v23 }
 0x176   : > { %v989_v19 = vpop.f32.mrf.mxu2 }
 0x177   : > { %v1049_v26 = vadd.f32 %v989_v19, %v744_v55  ;;  %v746_v2 = vpop.f32.mrf.mxu1  ;;  %v1267_v8 = vpop.f32.mrf.mxu3 }
 0x178   : > { %v747_v62 = vadd.f32 %v746_v2, %v4009_v48 }
 0x179   : > { %v4355_v9 = vadd.f32 %v1267_v8, %v1049_v26  ;;  %v4361_v21 = vpop.f32.mrf.mxu0  ;;  %v2182_v8 = vld [vmem:[#allocation2 + $0x79] sm:$0xff] }
 0x17a   : > { %3227 = vmatmul.msk.f32.gmra.mxu1 %vm182_vm1, %v3899_v23  ;;  %v2180_v23 = vld [vmem:[#allocation2 + $0x61] sm:$0xff] }
 0x17b   : > { %3261 = vmatmul.msk.f32.gmra.mxu2 %vm182_vm1, %v3901_v24 }
 0x17c   : > { %3295 = vmatmul.msk.f32.gmra.mxu3 %vm182_vm1, %v3856_v11  ;;  %3328 = vmatmul.msk.f32.gmra.mxu0 %vm182_vm1, %v3911_v25 }
 0x17e   : > { %v992_v22 = vpop.f32.mrf.mxu2 }
 0x17f   : > { %v1050_v38 = vadd.f32 %v992_v22, %v747_v62  ;;  %v749_v50 = vpop.f32.mrf.mxu1  ;;  %v1270_v5 = vpop.f32.mrf.mxu3 }
 0x180   : > { %v750_v11 = vadd.f32 %v749_v50, %v4027_v13 }
 0x181   : > { %v4368_v56 = vadd.f32 %v1270_v5, %v1050_v38  ;;  %v4374_v24 = vpop.f32.mrf.mxu0  ;;  %v4913_v38 = vld [vmem:[#allocation9_spill] sm:$0xff] }
 0x182   : > { %3228 = vmatmul.msk.f32.gmra.mxu1 %vm182_vm1, %v3911_v25 }
 0x183   : > { %3262 = vmatmul.msk.f32.gmra.mxu2 %vm182_vm1, %v3913_v27 }
 0x184   : > { %3296 = vmatmul.msk.f32.gmra.mxu3 %vm182_vm1, %v2180_v23  ;;  %3329 = vmatmul.msk.f32.gmra.mxu0 %vm182_vm1, %v3923_v29 }
 0x186   : > { %v995_v48 = vpop.f32.mrf.mxu2 }
 0x187   : > { %v1051_v57 = vadd.f32 %v995_v48, %v750_v11  ;;  %v752_v15 = vpop.f32.mrf.mxu1  ;;  %v1273_v36 = vpop.f32.mrf.mxu3  ;;  %v2183_v48 = vld [vmem:[#allocation2 + $0x81] sm:$0xff] }
 0x188   : > { %v753_v27 = vadd.f32 %v752_v15, %v4047_v10  ;;  %v4912_v10 = vld [vmem:[#allocation26_spill] sm:$0xff] }
 0x189   : > { %v4380_v58 = vadd.f32 %v1273_v36, %v1051_v57  ;;  %v4386_v25 = vpop.f32.mrf.mxu0  ;;  %v4914_v57 = vld [vmem:[#allocation10_spill] sm:$0xff]  ;;  %v4915_v36 = vld [vmem:[#allocation29_spill] sm:$0xff] }
 0x18a   : > { %3229 = vmatmul.msk.f32.gmra.mxu1 %vm182_vm1, %v3923_v29  ;;  %v4911_v29 = vld [vmem:[#allocation7_spill] sm:$0xff] }
 0x18b   : > { %3263 = vmatmul.msk.f32.gmra.mxu2 %vm182_vm1, %v3925_v31 }
 0x18c   : > { %3297 = vmatmul.msk.f32.gmra.mxu3 %vm182_vm1, %v2181_v6  ;;  %3330 = vmatmul.msk.f32.gmra.mxu0 %vm182_vm1, %v4910_v44 }
 0x18e   : > { %v998_v13 = vpop.f32.mrf.mxu2 }
 0x18f   : > { %v1052_v55 = vadd.f32 %v998_v13, %v753_v27  ;;  %v755_v19 = vpop.f32.mrf.mxu1  ;;  %v1276_v26 = vpop.f32.mrf.mxu3  ;;  %v4916_v13 = vld [vmem:[#allocation12_spill] sm:$0xff] }
 0x190   : > { %v756_v62 = vadd.f32 %v755_v19, %v4912_v10 }
 0x191   : > { %v4392_v2 = vadd.f32 %v1276_v26, %v1052_v55  ;;  %v4398_v31 = vpop.f32.mrf.mxu0 }
 0x192   : > { %3230 = vmatmul.msk.f32.gmra.mxu1 %vm182_vm1, %v4910_v44 }
 0x193   : > { %3264 = vmatmul.msk.f32.gmra.mxu2 %vm182_vm1, %v4911_v29  ;;  %v4917_v29 = vld [vmem:[#allocation13_spill] sm:$0xff] }
 0x194   : > { %3298 = vmatmul.msk.f32.gmra.mxu3 %vm182_vm1, %v2182_v8  ;;  %3331 = vmatmul.msk.f32.gmra.mxu0 %vm182_vm1, %v4913_v38  ;;  %v2184_v8 = vld [vmem:[#allocation2 + $0x91] sm:$0xff] }
 0x196   : > { %v1001_v22 = vpop.f32.mrf.mxu2 }
 0x197   : > { %v1053_v50 = vadd.f32 %v1001_v22, %v756_v62  ;;  %v758_v5 = vpop.f32.mrf.mxu1  ;;  %v1279_v23 = vpop.f32.mrf.mxu3  ;;  %v4918_v62 = vld [vmem:[#allocation8_spill] sm:$0xff] }
 0x198   : > { %v759_v6 = vadd.f32 %v758_v5, %v4915_v36  ;;  %v2185_v36 = vld [vmem:[#allocation2 + $0x99] sm:$0xff] }
 0x199   : > { %v4404_v11 = vadd.f32 %v1279_v23, %v1053_v50  ;;  %v4410_v15 = vpop.f32.mrf.mxu0  ;;  %v4919_v50 = vld [vmem:[#allocation15_spill] sm:$0xff] }
 0x19a   : > { %3231 = vmatmul.msk.f32.gmra.mxu1 %vm182_vm1, %v4913_v38 }
 0x19b   : > { %3265 = vmatmul.msk.f32.gmra.mxu2 %vm182_vm1, %v4914_v57 }
 0x19c   : > { %3299 = vmatmul.msk.f32.gmra.mxu3 %vm182_vm1, %v2183_v48  ;;  %3332 = vmatmul.msk.f32.gmra.mxu0 %vm182_vm1, %v4916_v13 }
 0x19e   : > { %v1004_v27 = vpop.f32.mrf.mxu2 }
 0x19f   : > { %v1054_v44 = vadd.f32 %v1004_v27, %v759_v6  ;;  %v761_v55 = vpop.f32.mrf.mxu1  ;;  %v1282_v19 = vpop.f32.mrf.mxu3  ;;  %v4920_v6 = vld [vmem:[#allocation16_spill] sm:$0xff] }
 0x1a0   : > { %v762_v22 = vadd.f32 %v761_v55, %v4918_v62 }
 0x1a1   : > { %v4416_v26 = vadd.f32 %v1282_v19, %v1054_v44  ;;  %v4422_v10 = vpop.f32.mrf.mxu0  ;;  %v4922_v19 = vld [vmem:[#allocation18_spill] sm:$0xff] }
 0x1a2   : > { %3232 = vmatmul.msk.f32.gmra.mxu1 %vm182_vm1, %v4916_v13  ;;  %v4921_v13 = vld [vmem:[#allocation11_spill] sm:$0xff] }
 0x1a3   : > { %3266 = vmatmul.msk.f32.gmra.mxu2 %vm182_vm1, %v4917_v29 }
 0x1a4   : > { %3300 = vmatmul.msk.f32.gmra.mxu3 %vm182_vm1, %v2184_v8  ;;  %3333 = vmatmul.msk.f32.gmra.mxu0 %vm182_vm1, %v4919_v50 }
 0x1a6   : > { %v1007_v38 = vpop.f32.mrf.mxu2 }
 0x1a7   : > { %v1055_v5 = vadd.f32 %v1007_v38, %v762_v22  ;;  %v764_v23 = vpop.f32.mrf.mxu1  ;;  %v1285_v48 = vpop.f32.mrf.mxu3  ;;  %v2186_v38 = vld [vmem:[#allocation2 + $0xa9] sm:$0xff] }
 0x1a8   : > { %v765_v44 = vadd.f32 %v764_v23, %v4921_v13  ;;  %v4925_v23 = vld [vmem:[#allocation14_spill] sm:$0xff] }
 0x1a9   : > { %v4428_v57 = vadd.f32 %v1285_v48, %v1055_v5  ;;  %v4434_v27 = vpop.f32.mrf.mxu0 }
 0x1aa   : > { %3233 = vmatmul.msk.f32.gmra.mxu1 %vm182_vm1, %v4919_v50  ;;  %v4923_v50 = vld [vmem:[#allocation19_spill] sm:$0xff] }
 0x1ab   : > { %3267 = vmatmul.msk.f32.gmra.mxu2 %vm182_vm1, %v4920_v6  ;;  %v4926_v6 = vld [vmem:[#allocation21_spill] sm:$0xff] }
 0x1ac   : > { %3301 = vmatmul.msk.f32.gmra.mxu3 %vm182_vm1, %v2185_v36  ;;  %3334 = vmatmul.msk.f32.gmra.mxu0 %vm182_vm1, %v4922_v19 }
 0x1ae   : > { %v1010_v55 = vpop.f32.mrf.mxu2 }
 0x1af   : > { %v1056_v8 = vadd.f32 %v1010_v55, %v765_v44  ;;  %v767_v29 = vpop.f32.mrf.mxu1  ;;  %v1288_v62 = vpop.f32.mrf.mxu3 }
 0x1b0   : > { %v768_v48 = vadd.f32 %v767_v29, %v4925_v23  ;;  %v4930_v29 = vld [vmem:[#allocation17_spill] sm:$0xff] }
 0x1b1   : > { %v4440_v22 = vadd.f32 %v1288_v62, %v1056_v8  ;;  %v4446_v5 = vpop.f32.mrf.mxu0  ;;  %v2187_v62 = vld [vmem:[#allocation2 + $0xb1] sm:$0xff] }
 0x1b2   : > { %3234 = vmatmul.msk.f32.gmra.mxu1 %vm182_vm1, %v4922_v19  ;;  %4924 = vst [vmem:[#allocation6_spill] sm:$0xff] %v4446_v5  ;;  %v4928_v19 = vld [vmem:[#allocation22_spill] sm:$0xff]  ;;  %v4931_v5 = vld [vmem:[#allocation24_spill] sm:$0xff] }
 0x1b3   : > { %3268 = vmatmul.msk.f32.gmra.mxu2 %vm182_vm1, %v4923_v50 }
 0x1b4   : > { %3302 = vmatmul.msk.f32.gmra.mxu3 %vm182_vm1, %v2186_v38  ;;  %3335 = vmatmul.msk.f32.gmra.mxu0 %vm182_vm1, %v4926_v6 }
 0x1b6   : > { %v1013_v36 = vpop.f32.mrf.mxu2 }
 0x1b7   : > { %v1057_v13 = vadd.f32 %v1013_v36, %v768_v48  ;;  %v770_v44 = vpop.f32.mrf.mxu1  ;;  %v1291_v55 = vpop.f32.mrf.mxu3 }
 0x1b8   : > { %v771_v38 = vadd.f32 %v770_v44, %v4930_v29  ;;  %v4934_v44 = vld [vmem:[#allocation20_spill] sm:$0xff] }
 0x1b9   : > { %v4452_v8 = vadd.f32 %v1291_v55, %v1057_v13  ;;  %v4458_v50 = vpop.f32.mrf.mxu0 }
 0x1ba   : > { %3235 = vmatmul.msk.f32.gmra.mxu1 %vm182_vm1, %v4926_v6  ;;  %4929 = vst [vmem:[#allocation26_spill] sm:$0xff] %v4458_v50  ;;  %v4933_v6 = vld [vmem:[#allocation25_spill] sm:$0xff]  ;;  %v4935_v50 = vld [vmem:[#allocation28_spill] sm:$0xff] }
 0x1bb   : > { %4927 = vst [vmem:[#allocation7_spill] sm:$0xff] %v4452_v8  ;;  %3269 = vmatmul.msk.f32.gmra.mxu2 %vm182_vm1, %v4928_v19  ;;  %v2188_v8 = vld [vmem:[#allocation2 + $0xc1] sm:$0xff] }
 0x1bc   : > { %3303 = vmatmul.msk.f32.gmra.mxu3 %vm182_vm1, %v2187_v62  ;;  %3336 = vmatmul.msk.f32.gmra.mxu0 %vm182_vm1, %v4931_v5 }
 0x1be   : > { %v1016_v23 = vpop.f32.mrf.mxu2 }
 0x1bf   : > { %v1058_v48 = vadd.f32 %v1016_v23, %v771_v38  ;;  %v773_v36 = vpop.f32.mrf.mxu1  ;;  %v1294_v13 = vpop.f32.mrf.mxu3 }
 0x1c0   : > { %v774_v62 = vadd.f32 %v773_v36, %v4934_v44  ;;  %v4938_v44 = vld [vmem:[#allocation31_spill] sm:$0xff] }
 0x1c1   : > { %v4464_v55 = vadd.f32 %v1294_v13, %v1058_v48  ;;  %v4470_v19 = vpop.f32.mrf.mxu0 }
 0x1c2   : > { %3236 = vmatmul.msk.f32.gmra.mxu1 %vm182_vm1, %v4931_v5 }
 0x1c3   : > { %4932 = vst [vmem:[#allocation9_spill] sm:$0xff] %v4464_v55  ;;  %3270 = vmatmul.msk.f32.gmra.mxu2 %vm182_vm1, %v4933_v6  ;;  %v2189_v55 = vld [vmem:[#allocation2 + $0xc9] sm:$0xff] }
 0x1c4   : > { %3304 = vmatmul.msk.f32.gmra.mxu3 %vm182_vm1, %v2188_v8  ;;  %3337 = vmatmul.msk.f32.gmra.mxu0 %vm182_vm1, %v4935_v50  ;;  %v4937_v8 = vld [vmem:[#allocation23_spill] sm:$0xff] }
 0x1c6   : > { %v1019_v29 = vpop.f32.mrf.mxu2 }
 0x1c7   : > { %v1059_v38 = vadd.f32 %v1019_v29, %v774_v62  ;;  %v776_v23 = vpop.f32.mrf.mxu1  ;;  %v1297_v48 = vpop.f32.mrf.mxu3 }
 0x1c8   : > { %v777_v36 = vadd.f32 %v776_v23, %v4937_v8 }
 0x1c9   : > { %v4476_v13 = vadd.f32 %v1297_v48, %v1059_v38  ;;  %v4482_v5 = vpop.f32.mrf.mxu0 }
 0x1ca   : > { %3237 = vmatmul.msk.f32.gmra.mxu1 %vm182_vm1, %v4935_v50  ;;  %v4939_v50 = vld [vmem:[#allocation27_spill] sm:$0xff] }
 0x1cb   : > { %4936 = vst [vmem:[#allocation10_spill] sm:$0xff] %v4476_v13  ;;  %3271 = vmatmul.msk.f32.gmra.mxu2 %vm182_vm1, %v4077_v46  ;;  %v2190_v13 = vld [vmem:[#allocation2 + $0xd9] sm:$0xff] }
 0x1cc   : > { %3305 = vmatmul.msk.f32.gmra.mxu3 %vm182_vm1, %v2189_v55  ;;  %3338 = vmatmul.msk.f32.gmra.mxu0 %vm182_vm1, %v4938_v44 }
 0x1ce   : > { %v1022_v6 = vpop.f32.mrf.mxu2 }
 0x1cf   : > { %v1060_v62 = vadd.f32 %v1022_v6, %v777_v36  ;;  %v779_v29 = vpop.f32.mrf.mxu1  ;;  %v1300_v38 = vpop.f32.mrf.mxu3 }
 0x1d0   : > { %v780_v55 = vadd.f32 %v779_v29, %v4939_v50 }
 0x1d1   : > { %v4488_v48 = vadd.f32 %v1300_v38, %v1060_v62  ;;  %v4494_v46 = vpop.f32.mrf.mxu0  ;;  %v2191_v38 = vld [vmem:[#allocation2 + $0xe1] sm:$0xff] }
 0x1d2   : > { %3238 = vmatmul.msk.f32.gmra.mxu1 %vm182_vm1, %v4938_v44 }
 0x1d3   : > { %3272 = vmatmul.msk.f32.gmra.mxu2 %vm182_vm1, %v4095_v39 }
 0x1d4   : > { %3306 = vmatmul.msk.f32.gmra.mxu3 %vm182_vm1, %v2190_v13  ;;  %3339 = vmatmul.msk.f32.gmra.mxu0 %vm182_vm1, %v4108_v35  ;;  %v4941_v13 = vld [vmem:[#allocation30_spill] sm:$0xff] }
 0x1d6   : > { %v1025_v23 = vpop.f32.mrf.mxu2 }
 0x1d7   : > { %v1061_v8 = vadd.f32 %v1025_v23, %v780_v55  ;;  %v782_v36 = vpop.f32.mrf.mxu1  ;;  %v1303_v6 = vpop.f32.mrf.mxu3 }
 0x1d8   : > { %v783_v44 = vadd.f32 %v782_v36, %v4941_v13 }
 0x1d9   : > { %v4500_v62 = vadd.f32 %v1303_v6, %v1061_v8  ;;  %v4506_v39 = vpop.f32.mrf.mxu0  ;;  %v2192_v6 = vld [vmem:[#allocation2 + $0xf1] sm:$0xff] }
 0x1da   : > { %3239 = vmatmul.msk.f32.gmra.mxu1 %vm182_vm1, %v4108_v35  ;;  %4940 = vst [vmem:[#allocation29_spill] sm:$0xff] %v4506_v39  ;;  %v4943_v35 = vld [vmem:[#allocation33_spill] sm:$0xff] }
 0x1db   : > { %3273 = vmatmul.msk.f32.gmra.mxu2 %vm182_vm1, %v4112_v34  ;;  %v4942_v34 = vld [vmem:[#allocation32_spill] sm:$0xff] }
 0x1dc   : > { %3307 = vmatmul.msk.f32.gmra.mxu3 %vm182_vm1, %v2191_v38  ;;  %3340 = vmatmul.msk.f32.gmra.mxu0 %vm182_vm1, %v4125_v18  ;;  %v1587_v39 = vadd.f32 %v4943_v35, %v4942_v34  ;;  %v4945_v34 = vld [vmem:[#allocation34_spill] sm:$0xff]  ;;  %v4946_v35 = vld [vmem:[#allocation35_spill] sm:$0xff] }
 0x1de   : > { %v1028_v29 = vpop.f32.mrf.mxu2 }
 0x1df   : > { %v1062_v50 = vadd.f32 %v1028_v29, %v783_v44  ;;  %v1306_v55 = vpop.f32.mrf.mxu3  ;;  %v1769_v23 = vpop.f32.mrf.mxu1 }
 0x1e0   : > { %v1865_v38 = vadd.f32 %v1769_v23, %v1587_v39 }
 0x1e1   : > { %v4512_v8 = vadd.f32 %v1306_v55, %v1062_v50  ;;  %v4520_v36 = vpop.f32.mrf.mxu0  ;;  %v2193_v55 = vld [vmem:[#allocation2 + $0xf9] sm:$0xff] }
 0x1e2   : > { %3240 = vmatmul.msk.f32.gmra.mxu1 %vm182_vm1, %v4125_v18  ;;  %4944 = vst [vmem:[#allocation12_spill] sm:$0xff] %v4520_v36 }
 0x1e3   : > { %3274 = vmatmul.msk.f32.gmra.mxu2 %vm182_vm1, %v4129_v43  ;;  %v1588_v43 = vadd.f32 %v4946_v35, %v4945_v34  ;;  %v4947_v34 = vld [vmem:[#allocation36_spill] sm:$0xff]  ;;  %v4948_v35 = vld [vmem:[#allocation37_spill] sm:$0xff] }
 0x1e4   : > { %3308 = vmatmul.msk.f32.gmra.mxu3 %vm182_vm1, %v2192_v6  ;;  %3341 = vmatmul.msk.f32.gmra.mxu0 %vm182_vm1, %v4142_v63 }
 0x1e6   : > { %v2048_v13 = vpop.f32.mrf.mxu2 }
 0x1e7   : > { %v2144_v44 = vadd.f32 %v2048_v13, %v1865_v38  ;;  %v1772_v29 = vpop.f32.mrf.mxu1  ;;  %v2326_v50 = vpop.f32.mrf.mxu3 }
 0x1e8   : > { %v1866_v23 = vadd.f32 %v1772_v29, %v1588_v43 }
 0x1e9   : > { %v2422_v18 = vadd.f32 %v2326_v50, %v2144_v44  ;;  %v2604_v39 = vpop.f32.mrf.mxu0  ;;  %v2194_v50 = vld [vmem:[#allocation2 + $0x109] sm:$0xff] }
 0x1ea   : > { %3241 = vmatmul.msk.f32.gmra.mxu1 %vm182_vm1, %v4142_v63 }
 0x1eb   : > { %3275 = vmatmul.msk.f32.gmra.mxu2 %vm182_vm1, %v4146_v32  ;;  %v2700_v6 = vadd.f32 %v2604_v39, %v2422_v18 }
 0x1ec   : > { %3309 = vmatmul.msk.f32.gmra.mxu3 %vm182_vm1, %v2193_v55  ;;  %3342 = vmatmul.msk.f32.gmra.mxu0 %vm182_vm1, %v4159_v45  ;;  %v1589_v55 = vadd.f32 %v4948_v35, %v4947_v34 }
 0x1ed   : > { %2732 = vst.msk [vmem:[%s4536_s4] sm:$0xff] %vm182_vm1, %v2700_v6  ;;  %v2834_v18 = vmul.f32 %v2700_v6, %v2700_v6 }
 0x1ee   : > { %v2051_v38 = vpop.f32.mrf.mxu2 }
 0x1ef   : > { %v2145_v32 = vadd.f32 %v2051_v38, %v1866_v23  ;;  %v1775_v63 = vpop.f32.mrf.mxu1  ;;  %v2329_v13 = vpop.f32.mrf.mxu3  ;;  %v2764_v38 = vsel %vm182_vm1, %v2700_v6, 0.0 }
 0x1f0   : > { %v1867_v43 = vadd.f32 %v1775_v63, %v1589_v55  ;;  %v2195_v55 = vld [vmem:[#allocation2 + $0x111] sm:$0xff] }
 0x1f1   : > { %v2423_v44 = vadd.f32 %v2329_v13, %v2145_v32  ;;  %v2607_v29 = vpop.f32.mrf.mxu0 }
 0x1f2   : > { %3242 = vmatmul.msk.f32.gmra.mxu1 %vm182_vm1, %v4159_v45 }
 0x1f3   : > { %3276 = vmatmul.msk.f32.gmra.mxu2 %vm182_vm1, %v4163_v41  ;;  %v2701_v39 = vadd.f32 %v2607_v29, %v2423_v44  ;;  %v4949_v29 = vld [vmem:[#allocation38_spill] sm:$0xff] }
 0x1f4   : > { %3310 = vmatmul.msk.f32.gmra.mxu3 %vm182_vm1, %v2194_v50  ;;  %3343 = vmatmul.msk.f32.gmra.mxu0 %vm182_vm1, %v4176_v28  ;;  %v2866_v50 = vsel %vm182_vm1, %v2834_v18, 0.0 }
 0x1f5   : > { %2733 = vst.msk [vmem:[%s4536_s4 + $0x8] sm:$0xff] %vm182_vm1, %v2701_v39  ;;  %v2765_v32 = vsel %vm182_vm1, %v2701_v39, 0.0  ;;  %v2835_v45 = vmul.f32 %v2701_v39, %v2701_v39  ;;  %v4950_v39 = vld [vmem:[#allocation39_spill] sm:$0xff] }
 0x1f6   : > { %v2054_v23 = vpop.f32.mrf.mxu2  ;;  %v2766_v35 = vadd.f32 %v2765_v32, %v2764_v38  ;;  %v1590_v36 = vadd.f32 %v4950_v39, %v4949_v29 }
 0x1f7   : > { %v2146_v13 = vadd.f32 %v2054_v23, %v1867_v43  ;;  %v1778_v34 = vpop.f32.mrf.mxu1  ;;  %v2332_v41 = vpop.f32.mrf.mxu3  ;;  %v2867_v63 = vsel %vm182_vm1, %v2835_v45, 0.0 }
 0x1f8   : > { %v2868_v6 = vadd.f32 %v2867_v63, %v2866_v50  ;;  %v1868_v23 = vadd.f32 %v1778_v34, %v1590_v36  ;;  %v4951_v34 = vld [vmem:[#allocation40_spill] sm:$0xff] }
 0x1f9   : > { %v2424_v44 = vadd.f32 %v2332_v41, %v2146_v13  ;;  %v2610_v43 = vpop.f32.mrf.mxu0 }
 0x1fa   : > { %3243 = vmatmul.msk.f32.gmra.mxu1 %vm182_vm1, %v4176_v28 }
 0x1fb   : > { %3277 = vmatmul.msk.f32.gmra.mxu2 %vm182_vm1, %v4180_v51  ;;  %v2702_v38 = vadd.f32 %v2610_v43, %v2424_v44  ;;  %v4952_v44 = vld [vmem:[#allocation41_spill] sm:$0xff] }
 0x1fc   : > { %3311 = vmatmul.msk.f32.gmra.mxu3 %vm182_vm1, %v2195_v55  ;;  %3344 = vmatmul.msk.f32.gmra.mxu0 %vm182_vm1, %v4193_v40  ;;  %v2196_v55 = vld [vmem:[#allocation2 + $0x121] sm:$0xff]  ;;  %v1591_v29 = vadd.f32 %v4952_v44, %v4951_v34 }
 0x1fd   : > { %2734 = vst.msk [vmem:[%s4536_s4 + $0x10] sm:$0xff] %vm182_vm1, %v2702_v38  ;;  %v2767_v32 = vsel %vm182_vm1, %v2702_v38, 0.0  ;;  %v2836_v45 = vmul.f32 %v2702_v38, %v2702_v38 }
 0x1fe   : > { %v2057_v18 = vpop.f32.mrf.mxu2  ;;  %v2768_v50 = vadd.f32 %v2767_v32, %v2766_v35 }
 0x1ff   : > { %v2147_v28 = vadd.f32 %v2057_v18, %v1868_v23  ;;  %v1781_v13 = vpop.f32.mrf.mxu1  ;;  %v2335_v41 = vpop.f32.mrf.mxu3  ;;  %v2869_v51 = vsel %vm182_vm1, %v2836_v45, 0.0 }
 0x200   : > { %v2870_v36 = vadd.f32 %v2869_v51, %v2868_v6  ;;  %v1869_v43 = vadd.f32 %v1781_v13, %v1591_v29  ;;  %v4953_v51 = vld [vmem:[#allocation42_spill] sm:$0xff] }
 0x201   : > { %v2425_v63 = vadd.f32 %v2335_v41, %v2147_v28  ;;  %v2613_v39 = vpop.f32.mrf.mxu0  ;;  %v2197_v41 = vld [vmem:[#allocation2 + $0x129] sm:$0xff] }
 0x202   : > { %3244 = vmatmul.msk.f32.gmra.mxu1 %vm182_vm1, %v4193_v40 }
 0x203   : > { %3278 = vmatmul.msk.f32.gmra.mxu2 %vm182_vm1, %v4197_v7  ;;  %v2703_v23 = vadd.f32 %v2613_v39, %v2425_v63  ;;  %v4954_v63 = vld [vmem:[#allocation43_spill] sm:$0xff] }
 0x204   : > { %3312 = vmatmul.msk.f32.gmra.mxu3 %vm182_vm1, %v2196_v55  ;;  %3345 = vmatmul.msk.f32.gmra.mxu0 %vm182_vm1, %v4210_v49  ;;  %v1592_v55 = vadd.f32 %v4954_v63, %v4953_v51 }
 0x205   : > { %2735 = vst.msk [vmem:[%s4536_s4 + $0x18] sm:$0xff] %vm182_vm1, %v2703_v23  ;;  %v2769_v38 = vsel %vm182_vm1, %v2703_v23, 0.0  ;;  %v2837_v6 = vmul.f32 %v2703_v23, %v2703_v23 }
 0x206   : > { %v2060_v35 = vpop.f32.mrf.mxu2  ;;  %v2770_v45 = vadd.f32 %v2769_v38, %v2768_v50  ;;  %v1920_v38 = vld [vmem:[#allocation2 + $0x138] sm:$0xff] }
 0x207   : > { %v2148_v40 = vadd.f32 %v2060_v35, %v1869_v43  ;;  %v1784_v18 = vpop.f32.mrf.mxu1  ;;  %v2338_v32 = vpop.f32.mrf.mxu3  ;;  %v2871_v7 = vsel %vm182_vm1, %v2837_v6, 0.0  ;;  %v1641_v35 = vld [vmem:[#allocation2 + $0x122] sm:$0xff] }
 0x208   : > { %v2872_v13 = vadd.f32 %v2871_v7, %v2870_v36  ;;  %v1870_v44 = vadd.f32 %v1784_v18, %v1592_v55  ;;  %v2198_v18 = vld [vmem:[#allocation2 + $0x139] sm:$0xff]  ;;  %v4955_v7 = vld [vmem:[#allocation44_spill] sm:$0xff] }
 0x209   : > { %v2426_v28 = vadd.f32 %v2338_v32, %v2148_v40  ;;  %v2616_v34 = vpop.f32.mrf.mxu0 }
 0x20a   : > { %3245 = vmatmul.msk.f32.gmra.mxu1 %vm182_vm1, %v4210_v49 }
 0x20b   : > { %3279 = vmatmul.msk.f32.gmra.mxu2 %vm182_vm1, %v4214_v52  ;;  %v2704_v29 = vadd.f32 %v2616_v34, %v2426_v28  ;;  %v4956_v28 = vld [vmem:[#allocation45_spill] sm:$0xff] }
 0x20c   : > { %3313 = vmatmul.msk.f32.gmra.mxu3 %vm182_vm1, %v2197_v41  ;;  %3346 = vmatmul.msk.f32.gmra.mxu0 %vm182_vm1, %v4227_v53  ;;  %v1593_v41 = vadd.f32 %v4956_v28, %v4955_v7  ;;  %v2476_v28 = vld [vmem:[#allocation2 + $0x13a] sm:$0xff] }
 0x20d   : > { %2736 = vst.msk [vmem:[%s4536_s4 + $0x20] sm:$0xff] %vm182_vm1, %v2704_v29  ;;  %v2771_v39 = vsel %vm182_vm1, %v2704_v29, 0.0  ;;  %v2838_v36 = vmul.f32 %v2704_v29, %v2704_v29 }
 0x20e   : > { %v2063_v50 = vpop.f32.mrf.mxu2  ;;  %v2772_v52 = vadd.f32 %v2771_v39, %v2770_v45  ;;  %v1642_v39 = vld [vmem:[#allocation2 + $0x12a] sm:$0xff] }
 0x20f   : > { %v2149_v49 = vadd.f32 %v2063_v50, %v1870_v44  ;;  %v1787_v43 = vpop.f32.mrf.mxu1  ;;  %v2341_v23 = vpop.f32.mrf.mxu3  ;;  %v2873_v6 = vsel %vm182_vm1, %v2838_v36, 0.0  ;;  %v4957_v44 = vld [vmem:[#allocation48_spill] sm:$0xff] }
 0x210   : > { %v2874_v32 = vadd.f32 %v2873_v6, %v2872_v13  ;;  %v1871_v51 = vadd.f32 %v1787_v43, %v1593_v41  ;;  %v4958_v6 = vld [vmem:[#allocation46_spill] sm:$0xff] }
 0x211   : > { %v2427_v40 = vadd.f32 %v2341_v23, %v2149_v49  ;;  %v2619_v53 = vpop.f32.mrf.mxu0  ;;  %v1921_v49 = vld [vmem:[#allocation2 + $0x140] sm:$0xff] }
 0x212   : > { %3246 = vmatmul.msk.f32.gmra.mxu1 %vm182_vm1, %v1641_v35  ;;  %v2199_v35 = vld [vmem:[#allocation2 + $0x141] sm:$0xff] }
 0x213   : > { %3280 = vmatmul.msk.f32.gmra.mxu2 %vm182_vm1, %v1920_v38  ;;  %v2705_v63 = vadd.f32 %v2619_v53, %v2427_v40  ;;  %v4959_v40 = vld [vmem:[#allocation47_spill] sm:$0xff] }
 0x214   : > { %3314 = vmatmul.msk.f32.gmra.mxu3 %vm182_vm1, %v2198_v18  ;;  %3347 = vmatmul.msk.f32.gmra.mxu0 %vm182_vm1, %v4957_v44  ;;  %v1594_v18 = vadd.f32 %v4959_v40, %v4958_v6  ;;  %v1922_v44 = vld [vmem:[#allocation2 + $0x150] sm:$0xff] }
 0x215   : > { %2737 = vst.msk [vmem:[%s4536_s4 + $0x28] sm:$0xff] %vm182_vm1, %v2705_v63  ;;  %v2773_v45 = vsel %vm182_vm1, %v2705_v63, 0.0  ;;  %v2839_v34 = vmul.f32 %v2705_v63, %v2705_v63 }
 0x216   : > { %v2066_v55 = vpop.f32.mrf.mxu2  ;;  %v2774_v36 = vadd.f32 %v2773_v45, %v2772_v52 }
 0x217   : > { %v2150_v13 = vadd.f32 %v2066_v55, %v1871_v51  ;;  %v1790_v29 = vpop.f32.mrf.mxu1  ;;  %v2344_v50 = vpop.f32.mrf.mxu3  ;;  %v2875_v23 = vsel %vm182_vm1, %v2839_v34, 0.0 }
 0x218   : > { %v2876_v38 = vadd.f32 %v2875_v23, %v2874_v32  ;;  %v1872_v41 = vadd.f32 %v1790_v29, %v1594_v18 }
 0x219   : > { %v2428_v43 = vadd.f32 %v2344_v50, %v2150_v13  ;;  %v2622_v7 = vpop.f32.mrf.mxu0 }
 0x21a   : > { %3247 = vmatmul.msk.f32.gmra.mxu1 %vm182_vm1, %v1642_v39  ;;  %v2200_v39 = vld [vmem:[#allocation2 + $0x151] sm:$0xff] }
 0x21b   : > { %3281 = vmatmul.msk.f32.gmra.mxu2 %vm182_vm1, %v1921_v49  ;;  %v2706_v53 = vadd.f32 %v2622_v7, %v2428_v43  ;;  %v4960_v49 = vld [vmem:[#allocation49_spill] sm:$0xff] }
 0x21c   : > { %3315 = vmatmul.msk.f32.gmra.mxu3 %vm182_vm1, %v2199_v35  ;;  %3348 = vmatmul.msk.f32.gmra.mxu0 %vm182_vm1, %v2476_v28  ;;  %v1595_v23 = vadd.f32 %v4249_v12, %v4960_v49  ;;  %v2477_v35 = vld [vmem:[#allocation2 + $0x142] sm:$0xff] }
 0x21d   : > { %2738 = vst.msk [vmem:[%s4536_s4 + $0x30] sm:$0xff] %vm182_vm1, %v2706_v53  ;;  %v2775_v51 = vsel %vm182_vm1, %v2706_v53, 0.0  ;;  %v2840_v63 = vmul.f32 %v2706_v53, %v2706_v53  ;;  %v1923_v53 = vld [vmem:[#allocation2 + $0x158] sm:$0xff] }
 0x21e   : > { %v2069_v52 = vpop.f32.mrf.mxu2  ;;  %v2776_v34 = vadd.f32 %v2775_v51, %v2774_v36 }
 0x21f   : > { %v2151_v32 = vadd.f32 %v2069_v52, %v1872_v41  ;;  %v1793_v55 = vpop.f32.mrf.mxu1  ;;  %v2347_v45 = vpop.f32.mrf.mxu3  ;;  %v2877_v13 = vsel %vm182_vm1, %v2840_v63, 0.0  ;;  %v2201_v63 = vld [vmem:[#allocation2 + $0x159] sm:$0xff] }
 0x220   : > { %v2878_v29 = vadd.f32 %v2877_v13, %v2876_v38  ;;  %v1873_v6 = vadd.f32 %v1793_v55, %v1595_v23  ;;  %v4961_v55 = vld [vmem:[#allocation50_spill] sm:$0xff] }
 0x221   : > { %v2429_v50 = vadd.f32 %v2347_v45, %v2151_v32  ;;  %v2625_v43 = vpop.f32.mrf.mxu0  ;;  %v1596_v45 = vadd.f32 %v4961_v55, %v4257_v60  ;;  %v2478_v13 = vld [vmem:[#allocation2 + $0x152] sm:$0xff] }
 0x222   : > { %3248 = vmatmul.msk.f32.gmra.mxu1 %vm182_vm1, %v2476_v28 }
 0x223   : > { %3282 = vmatmul.msk.f32.gmra.mxu2 %vm182_vm1, %v1922_v44  ;;  %v2707_v40 = vadd.f32 %v2625_v43, %v2429_v50 }
 0x224   : > { %3316 = vmatmul.msk.f32.gmra.mxu3 %vm182_vm1, %v2200_v39  ;;  %3349 = vmatmul.msk.f32.gmra.mxu0 %vm182_vm1, %v2477_v35 }
 0x225   : > { %2739 = vst.msk [vmem:[%s4536_s4 + $0x38] sm:$0xff] %vm182_vm1, %v2707_v40  ;;  %v2777_v18 = vsel %vm182_vm1, %v2707_v40, 0.0  ;;  %v2841_v7 = vmul.f32 %v2707_v40, %v2707_v40 }
 0x226   : > { %v2072_v36 = vpop.f32.mrf.mxu2  ;;  %v2778_v12 = vadd.f32 %v2777_v18, %v2776_v34  ;;  %v2202_v18 = vld [vmem:[#allocation2 + $0x169] sm:$0xff] }
 0x227   : > { %v2152_v38 = vadd.f32 %v2072_v36, %v1873_v6  ;;  %v1796_v28 = vpop.f32.mrf.mxu1  ;;  %v2350_v41 = vpop.f32.mrf.mxu3  ;;  %v2879_v52 = vsel %vm182_vm1, %v2841_v7, 0.0  ;;  %v1924_v6 = vld [vmem:[#allocation2 + $0x168] sm:$0xff] }
 0x228   : > { %v2880_v32 = vadd.f32 %v2879_v52, %v2878_v29  ;;  %v1874_v50 = vadd.f32 %v1796_v28, %v1596_v45 }
 0x229   : > { %v2430_v51 = vadd.f32 %v2350_v41, %v2152_v38  ;;  %v2628_v44 = vpop.f32.mrf.mxu0  ;;  %v1597_v38 = vadd.f32 %v4273_v16, %v4269_v59  ;;  %v2479_v41 = vld [vmem:[#allocation2 + $0x15a] sm:$0xff]  ;;  %v1925_v59 = vld [vmem:[#allocation2 + $0x170] sm:$0xff] }
 0x22a   : > { %3249 = vmatmul.msk.f32.gmra.mxu1 %vm182_vm1, %v2477_v35 }
 0x22b   : > { %3283 = vmatmul.msk.f32.gmra.mxu2 %vm182_vm1, %v1923_v53  ;;  %v2708_v39 = vadd.f32 %v2628_v44, %v2430_v51 }
 0x22c   : > { %3317 = vmatmul.msk.f32.gmra.mxu3 %vm182_vm1, %v2201_v63  ;;  %3350 = vmatmul.msk.f32.gmra.mxu0 %vm182_vm1, %v2478_v13 }
 0x22d   : > { %2740 = vst.msk [vmem:[%s4536_s4 + $0x40] sm:$0xff] %vm182_vm1, %v2708_v39  ;;  %v2779_v49 = vsel %vm182_vm1, %v2708_v39, 0.0  ;;  %v2842_v23 = vmul.f32 %v2708_v39, %v2708_v39 }
 0x22e   : > { %v2075_v34 = vpop.f32.mrf.mxu2  ;;  %v2780_v60 = vadd.f32 %v2779_v49, %v2778_v12 }
 0x22f   : > { %v2153_v29 = vadd.f32 %v2075_v34, %v1874_v50  ;;  %v1799_v43 = vpop.f32.mrf.mxu1  ;;  %v2353_v35 = vpop.f32.mrf.mxu3  ;;  %v2881_v40 = vsel %vm182_vm1, %v2842_v23, 0.0  ;;  %v2203_v50 = vld [vmem:[#allocation2 + $0x171] sm:$0xff]  ;;  %v1598_v34 = vadd.f32 %v4283_v0, %v4279_v33  ;;  %v1926_v0 = vld [vmem:[#allocation2 + $0x180] sm:$0xff] }
 0x230   : > { %v2882_v7 = vadd.f32 %v2881_v40, %v2880_v32  ;;  %v1875_v53 = vadd.f32 %v1799_v43, %v1597_v38  ;;  %v2480_v23 = vld [vmem:[#allocation2 + $0x16a] sm:$0xff] }
 0x231   : > { %v2431_v36 = vadd.f32 %v2353_v35, %v2153_v29  ;;  %v2631_v28 = vpop.f32.mrf.mxu0 }
 0x232   : > { %3250 = vmatmul.msk.f32.gmra.mxu1 %vm182_vm1, %v2478_v13 }
 0x233   : > { %3284 = vmatmul.msk.f32.gmra.mxu2 %vm182_vm1, %v1924_v6  ;;  %v2709_v52 = vadd.f32 %v2631_v28, %v2431_v36  ;;  %v2204_v28 = vld [vmem:[#allocation2 + $0x181] sm:$0xff] }
 0x234   : > { %3318 = vmatmul.msk.f32.gmra.mxu3 %vm182_vm1, %v2202_v18  ;;  %3351 = vmatmul.msk.f32.gmra.mxu0 %vm182_vm1, %v2479_v41 }
 0x235   : > { %2741 = vst.msk [vmem:[%s4536_s4 + $0x48] sm:$0xff] %vm182_vm1, %v2709_v52  ;;  %v2781_v51 = vsel %vm182_vm1, %v2709_v52, 0.0  ;;  %v2843_v63 = vmul.f32 %v2709_v52, %v2709_v52 }
 0x236   : > { %v2078_v12 = vpop.f32.mrf.mxu2  ;;  %v2782_v16 = vadd.f32 %v2781_v51, %v2780_v60 }
 0x237   : > { %v2154_v32 = vadd.f32 %v2078_v12, %v1875_v53  ;;  %v1802_v55 = vpop.f32.mrf.mxu1  ;;  %v2356_v45 = vpop.f32.mrf.mxu3  ;;  %v2883_v44 = vsel %vm182_vm1, %v2843_v63, 0.0  ;;  %v1599_v53 = vadd.f32 %v4293_v1, %v4289_v47  ;;  %v2481_v12 = vld [vmem:[#allocation2 + $0x172] sm:$0xff]  ;;  %v1927_v1 = vld [vmem:[#allocation2 + $0x188] sm:$0xff] }
 0x238   : > { %v2884_v39 = vadd.f32 %v2883_v44, %v2882_v7  ;;  %v1876_v29 = vadd.f32 %v1802_v55, %v1598_v34 }
 0x239   : > { %v2432_v13 = vadd.f32 %v2356_v45, %v2154_v32  ;;  %v2634_v49 = vpop.f32.mrf.mxu0 }
 0x23a   : > { %3251 = vmatmul.msk.f32.gmra.mxu1 %vm182_vm1, %v2479_v41 }
 0x23b   : > { %3285 = vmatmul.msk.f32.gmra.mxu2 %vm182_vm1, %v1925_v59  ;;  %v2710_v43 = vadd.f32 %v2634_v49, %v2432_v13  ;;  %v1600_v49 = vadd.f32 %v4303_v37, %v4299_v54  ;;  %v1928_v37 = vld [vmem:[#allocation2 + $0x198] sm:$0xff] }
 0x23c   : > { %3319 = vmatmul.msk.f32.gmra.mxu3 %vm182_vm1, %v2203_v50  ;;  %3352 = vmatmul.msk.f32.gmra.mxu0 %vm182_vm1, %v2480_v23 }
 0x23d   : > { %2742 = vst.msk [vmem:[%s4536_s4 + $0x50] sm:$0xff] %vm182_vm1, %v2710_v43  ;;  %v2783_v60 = vsel %vm182_vm1, %v2710_v43, 0.0  ;;  %v2844_v6 = vmul.f32 %v2710_v43, %v2710_v43 }
 0x23e   : > { %v2081_v35 = vpop.f32.mrf.mxu2  ;;  %v2784_v33 = vadd.f32 %v2783_v60, %v2782_v16 }
 0x23f   : > { %v2155_v40 = vadd.f32 %v2081_v35, %v1876_v29  ;;  %v1805_v36 = vpop.f32.mrf.mxu1  ;;  %v2359_v18 = vpop.f32.mrf.mxu3  ;;  %v2885_v7 = vsel %vm182_vm1, %v2844_v6, 0.0  ;;  %v2482_v29 = vld [vmem:[#allocation2 + $0x182] sm:$0xff] }
 0x240   : > { %v2886_v41 = vadd.f32 %v2885_v7, %v2884_v39  ;;  %v1877_v51 = vadd.f32 %v1805_v36, %v1599_v53  ;;  %v2205_v39 = vld [vmem:[#allocation2 + $0x189] sm:$0xff] }
 0x241   : > { %v2433_v38 = vadd.f32 %v2359_v18, %v2155_v40  ;;  %v2637_v52 = vpop.f32.mrf.mxu0 }
 0x242   : > { %3252 = vmatmul.msk.f32.gmra.mxu1 %vm182_vm1, %v2480_v23 }
 0x243   : > { %3286 = vmatmul.msk.f32.gmra.mxu2 %vm182_vm1, %v1926_v0  ;;  %v2711_v63 = vadd.f32 %v2637_v52, %v2433_v38  ;;  %v2206_v38 = vld [vmem:[#allocation2 + $0x199] sm:$0xff]  ;;  %v2483_v52 = vld [vmem:[#allocation2 + $0x18a] sm:$0xff] }
 0x244   : > { %3320 = vmatmul.msk.f32.gmra.mxu3 %vm182_vm1, %v2204_v28  ;;  %3353 = vmatmul.msk.f32.gmra.mxu0 %vm182_vm1, %v2481_v12 }
 0x245   : > { %2743 = vst.msk [vmem:[%s4536_s4 + $0x58] sm:$0xff] %vm182_vm1, %v2711_v63  ;;  %v2785_v55 = vsel %vm182_vm1, %v2711_v63, 0.0  ;;  %v2845_v45 = vmul.f32 %v2711_v63, %v2711_v63 }
 0x246   : > { %v2084_v32 = vpop.f32.mrf.mxu2  ;;  %v2786_v47 = vadd.f32 %v2785_v55, %v2784_v33 }
 0x247   : > { %v2156_v16 = vadd.f32 %v2084_v32, %v1877_v51  ;;  %v1808_v59 = vpop.f32.mrf.mxu1  ;;  %v2362_v44 = vpop.f32.mrf.mxu3  ;;  %v2887_v13 = vsel %vm182_vm1, %v2845_v45, 0.0 }
 0x248   : > { %v2888_v34 = vadd.f32 %v2887_v13, %v2886_v41  ;;  %v1878_v43 = vadd.f32 %v1808_v59, %v1600_v49  ;;  %v1601_v41 = vadd.f32 %v4313_v20, %v4309_v61  ;;  %v1929_v20 = vld [vmem:[#allocation2 + $0x1a0] sm:$0xff] }
 0x249   : > { %v2434_v50 = vadd.f32 %v2362_v44, %v2156_v16  ;;  %v2640_v23 = vpop.f32.mrf.mxu0 }
 0x24a   : > { %3253 = vmatmul.msk.f32.gmra.mxu1 %vm182_vm1, %v2481_v12 }
 0x24b   : > { %3287 = vmatmul.msk.f32.gmra.mxu2 %vm182_vm1, %v1927_v1  ;;  %v2712_v35 = vadd.f32 %v2640_v23, %v2434_v50  ;;  %v2207_v1 = vld [vmem:[#allocation2 + $0x1a1] sm:$0xff]  ;;  %v1602_v50 = vadd.f32 %v4324_v42, %v4318_v3 }
 0x24c   : > { %3321 = vmatmul.msk.f32.gmra.mxu3 %vm182_vm1, %v2205_v39  ;;  %3354 = vmatmul.msk.f32.gmra.mxu0 %vm182_vm1, %v2482_v29 }
 0x24d   : > { %2744 = vst.msk [vmem:[%s4536_s4 + $0x60] sm:$0xff] %vm182_vm1, %v2712_v35  ;;  %v2787_v6 = vsel %vm182_vm1, %v2712_v35, 0.0  ;;  %v2846_v40 = vmul.f32 %v2712_v35, %v2712_v35 }
 0x24e   : > { %v2087_v60 = vpop.f32.mrf.mxu2  ;;  %v2788_v54 = vadd.f32 %v2787_v6, %v2786_v47 }
 0x24f   : > { %v2157_v36 = vadd.f32 %v2087_v60, %v1878_v43  ;;  %v1811_v18 = vpop.f32.mrf.mxu1  ;;  %v2365_v33 = vpop.f32.mrf.mxu3  ;;  %v2889_v0 = vsel %vm182_vm1, %v2846_v40, 0.0 }
 0x250   : > { %v2890_v28 = vadd.f32 %v2889_v0, %v2888_v34  ;;  %v1879_v12 = vadd.f32 %v1811_v18, %v1601_v41  ;;  %v2484_v34 = vld [vmem:[#allocation2 + $0x19a] sm:$0xff] }
 0x251   : > { %v2435_v7 = vadd.f32 %v2365_v33, %v2157_v36  ;;  %v2643_v53 = vpop.f32.mrf.mxu0  ;;  %v1603_v33 = vadd.f32 %v4335_v4, %v4329_v30 }
 0x252   : > { %3254 = vmatmul.msk.f32.gmra.mxu1 %vm182_vm1, %v2482_v29 }
 0x253   : > { %3288 = vmatmul.msk.f32.gmra.mxu2 %vm182_vm1, %v1928_v37  ;;  %v2713_v51 = vadd.f32 %v2643_v53, %v2435_v7  ;;  %v2485_v37 = vld [vmem:[#allocation2 + $0x1a2] sm:$0xff] }
 0x254   : > { %3322 = vmatmul.msk.f32.gmra.mxu3 %vm182_vm1, %v2206_v38  ;;  %3355 = vmatmul.msk.f32.gmra.mxu0 %vm182_vm1, %v2483_v52 }
 0x255   : > { %2745 = vst.msk [vmem:[%s4536_s4 + $0x68] sm:$0xff] %vm182_vm1, %v2713_v51  ;;  %v2789_v32 = vsel %vm182_vm1, %v2713_v51, 0.0  ;;  %v2847_v55 = vmul.f32 %v2713_v51, %v2713_v51 }
 0x256   : > { %v2090_v63 = vpop.f32.mrf.mxu2  ;;  %v2790_v61 = vadd.f32 %v2789_v32, %v2788_v54  ;;  %v1604_v32 = vadd.f32 %v4348_v17, %v4342_v14  ;;  %v1605_v14 = vadd.f32 %v4361_v21, %v4355_v9  ;;  %v1606_v9 = vadd.f32 %v4374_v24, %v4368_v56 }
 0x257   : > { %v2158_v45 = vadd.f32 %v2090_v63, %v1879_v12  ;;  %v1814_v16 = vpop.f32.mrf.mxu1  ;;  %v2368_v59 = vpop.f32.mrf.mxu3  ;;  %v2891_v44 = vsel %vm182_vm1, %v2847_v55, 0.0  ;;  %v1607_v56 = vadd.f32 %v4386_v25, %v4380_v58  ;;  %v1608_v58 = vadd.f32 %v4398_v31, %v4392_v2 }
 0x258   : > { %v2892_v13 = vadd.f32 %v2891_v44, %v2890_v28  ;;  %v1880_v49 = vadd.f32 %v1814_v16, %v1602_v50  ;;  %v1609_v2 = vadd.f32 %v4410_v15, %v4404_v11  ;;  %v1610_v11 = vadd.f32 %v4422_v10, %v4416_v26 }
 0x259   : > { %v2436_v47 = vadd.f32 %v2368_v59, %v2158_v45  ;;  %v2646_v39 = vpop.f32.mrf.mxu0  ;;  %v1611_v26 = vadd.f32 %v4434_v27, %v4428_v57  ;;  %v4962_v57 = vld [vmem:[#allocation6_spill] sm:$0xff] }
 0x25a   : > { %3255 = vmatmul.msk.f32.gmra.mxu1 %vm182_vm1, %v2483_v52  ;;  %v1612_v27 = vadd.f32 %v4962_v57, %v4440_v22  ;;  %v4964_v22 = vld [vmem:[#allocation26_spill] sm:$0xff] }
 0x25b   : > { %3289 = vmatmul.msk.f32.gmra.mxu2 %vm182_vm1, %v1929_v20  ;;  %v2714_v23 = vadd.f32 %v2646_v39, %v2436_v47 }
 0x25c   : > { %3323 = vmatmul.msk.f32.gmra.mxu3 %vm182_vm1, %v2207_v1  ;;  %3356 = vmatmul.msk.f32.gmra.mxu0 %vm182_vm1, %v2484_v34 }
 0x25d   : > { %2746 = vst.msk [vmem:[%s4536_s4 + $0x70] sm:$0xff] %vm182_vm1, %v2714_v23  ;;  %v2791_v43 = vsel %vm182_vm1, %v2714_v23, 0.0  ;;  %v2848_v35 = vmul.f32 %v2714_v23, %v2714_v23 }
 0x25e   : > { %v2093_v29 = vpop.f32.mrf.mxu2  ;;  %v2792_v42 = vadd.f32 %v2791_v43, %v2790_v61 }
 0x25f   : > { %v2159_v60 = vadd.f32 %v2093_v29, %v1880_v49  ;;  %v1817_v6 = vpop.f32.mrf.mxu1  ;;  %v2371_v3 = vpop.f32.mrf.mxu3  ;;  %v2893_v40 = vsel %vm182_vm1, %v2848_v35, 0.0 }
 0x260   : > { %v2894_v18 = vadd.f32 %v2893_v40, %v2892_v13  ;;  %v1881_v0 = vadd.f32 %v1817_v6, %v1603_v33 }
 0x261   : > { %v2437_v36 = vadd.f32 %v2371_v3, %v2159_v60  ;;  %v2649_v54 = vpop.f32.mrf.mxu0 }
 0x263   : > { %v2715_v7 = vadd.f32 %v2649_v54, %v2437_v36 }
 0x264   : > { %3357 = vmatmul.msk.f32.gmra.mxu0 %vm182_vm1, %v2485_v37 }
 0x265   : > { %2747 = vst.msk [vmem:[%s4536_s4 + $0x78] sm:$0xff] %vm182_vm1, %v2715_v7  ;;  %v2793_v28 = vsel %vm182_vm1, %v2715_v7, 0.0  ;;  %v2849_v41 = vmul.f32 %v2715_v7, %v2715_v7 }
 0x266   : > { %v2096_v38 = vpop.f32.mrf.mxu2  ;;  %v2794_v51 = vadd.f32 %v2793_v28, %v2792_v42 }
 0x267   : > { %v2160_v53 = vadd.f32 %v2096_v38, %v1881_v0  ;;  %v1820_v52 = vpop.f32.mrf.mxu1  ;;  %v2374_v12 = vpop.f32.mrf.mxu3  ;;  %v2895_v63 = vsel %vm182_vm1, %v2849_v41, 0.0 }
 0x268   : > { %v2896_v4 = vadd.f32 %v2895_v63, %v2894_v18  ;;  %v1882_v45 = vadd.f32 %v1820_v52, %v1604_v32 }
 0x269   : > { %v2438_v30 = vadd.f32 %v2374_v12, %v2160_v53  ;;  %v2652_v55 = vpop.f32.mrf.mxu0 }
 0x26b   : > { %v2716_v16 = vadd.f32 %v2652_v55, %v2438_v30 }
 0x26d   : > { %2748 = vst.msk [vmem:[%s4536_s4 + $0x80] sm:$0xff] %vm182_vm1, %v2716_v16  ;;  %v2795_v61 = vsel %vm182_vm1, %v2716_v16, 0.0  ;;  %v2850_v20 = vmul.f32 %v2716_v16, %v2716_v16 }
 0x26e   : > { %v2099_v59 = vpop.f32.mrf.mxu2  ;;  %v2796_v13 = vadd.f32 %v2795_v61, %v2794_v51 }
 0x26f   : > { %v2161_v44 = vadd.f32 %v2099_v59, %v1882_v45  ;;  %v1823_v47 = vpop.f32.mrf.mxu1  ;;  %v2377_v1 = vpop.f32.mrf.mxu3  ;;  %v2897_v50 = vsel %vm182_vm1, %v2850_v20, 0.0 }
 0x270   : > { %v2898_v34 = vadd.f32 %v2897_v50, %v2896_v4  ;;  %v1883_v49 = vadd.f32 %v1823_v47, %v1605_v14 }
 0x271   : > { %v2439_v39 = vadd.f32 %v2377_v1, %v2161_v44  ;;  %v2655_v17 = vpop.f32.mrf.mxu0 }
 0x273   : > { %v2717_v23 = vadd.f32 %v2655_v17, %v2439_v39 }
 0x275   : > { %2749 = vst.msk [vmem:[%s4536_s4 + $0x88] sm:$0xff] %vm182_vm1, %v2717_v23  ;;  %v2797_v43 = vsel %vm182_vm1, %v2717_v23, 0.0  ;;  %v2851_v35 = vmul.f32 %v2717_v23, %v2717_v23 }
 0x276   : > { %v2102_v29 = vpop.f32.mrf.mxu2  ;;  %v2798_v42 = vadd.f32 %v2797_v43, %v2796_v13 }
 0x277   : > { %v2162_v60 = vadd.f32 %v2102_v29, %v1883_v49  ;;  %v1826_v6 = vpop.f32.mrf.mxu1  ;;  %v2380_v3 = vpop.f32.mrf.mxu3  ;;  %v2899_v40 = vsel %vm182_vm1, %v2851_v35, 0.0 }
 0x278   : > { %v2900_v18 = vadd.f32 %v2899_v40, %v2898_v34  ;;  %v1884_v33 = vadd.f32 %v1826_v6, %v1606_v9 }
 0x279   : > { %v2440_v36 = vadd.f32 %v2380_v3, %v2162_v60  ;;  %v2658_v21 = vpop.f32.mrf.mxu0 }
 0x27b   : > { %v2718_v54 = vadd.f32 %v2658_v21, %v2440_v36 }
 0x27d   : > { %2750 = vst.msk [vmem:[%s4536_s4 + $0x90] sm:$0xff] %vm182_vm1, %v2718_v54  ;;  %v2799_v0 = vsel %vm182_vm1, %v2718_v54, 0.0  ;;  %v2852_v7 = vmul.f32 %v2718_v54, %v2718_v54 }
 0x27e   : > { %v2105_v37 = vpop.f32.mrf.mxu2  ;;  %v2800_v53 = vadd.f32 %v2799_v0, %v2798_v42 }
 0x27f   : > { %v2163_v38 = vadd.f32 %v2105_v37, %v1884_v33  ;;  %v1829_v28 = vpop.f32.mrf.mxu1  ;;  %v2383_v41 = vpop.f32.mrf.mxu3  ;;  %v2901_v52 = vsel %vm182_vm1, %v2852_v7, 0.0 }
 0x280   : > { %v2902_v51 = vadd.f32 %v2901_v52, %v2900_v18  ;;  %v1885_v63 = vadd.f32 %v1829_v28, %v1607_v56 }
 0x281   : > { %v2441_v12 = vadd.f32 %v2383_v41, %v2163_v38  ;;  %v2661_v24 = vpop.f32.mrf.mxu0 }
 0x283   : > { %v2719_v30 = vadd.f32 %v2661_v24, %v2441_v12 }
 0x285   : > { %2751 = vst.msk [vmem:[%s4536_s4 + $0x98] sm:$0xff] %vm182_vm1, %v2719_v30  ;;  %v2801_v32 = vsel %vm182_vm1, %v2719_v30, 0.0  ;;  %v2853_v55 = vmul.f32 %v2719_v30, %v2719_v30 }
 0x286   : > { %v2108_v4 = vpop.f32.mrf.mxu2  ;;  %v2802_v61 = vadd.f32 %v2801_v32, %v2800_v53 }
 0x287   : > { %v2164_v45 = vadd.f32 %v2108_v4, %v1885_v63  ;;  %v1832_v16 = vpop.f32.mrf.mxu1  ;;  %v2386_v59 = vpop.f32.mrf.mxu3  ;;  %v2903_v20 = vsel %vm182_vm1, %v2853_v55, 0.0 }
 0x288   : > { %v2904_v47 = vadd.f32 %v2903_v20, %v2902_v51  ;;  %v1886_v1 = vadd.f32 %v1832_v16, %v1608_v58 }
 0x289   : > { %v2442_v44 = vadd.f32 %v2386_v59, %v2164_v45  ;;  %v2664_v25 = vpop.f32.mrf.mxu0 }
 0x28b   : > { %v2720_v13 = vadd.f32 %v2664_v25, %v2442_v44 }
 0x28d   : > { %2752 = vst.msk [vmem:[%s4536_s4 + $0xa0] sm:$0xff] %vm182_vm1, %v2720_v13  ;;  %v2803_v39 = vsel %vm182_vm1, %v2720_v13, 0.0  ;;  %v2854_v34 = vmul.f32 %v2720_v13, %v2720_v13 }
 0x28e   : > { %v2111_v50 = vpop.f32.mrf.mxu2  ;;  %v2804_v23 = vadd.f32 %v2803_v39, %v2802_v61 }
 0x28f   : > { %v2165_v14 = vadd.f32 %v2111_v50, %v1886_v1  ;;  %v1835_v17 = vpop.f32.mrf.mxu1  ;;  %v2389_v49 = vpop.f32.mrf.mxu3  ;;  %v2905_v29 = vsel %vm182_vm1, %v2854_v34, 0.0 }
 0x290   : > { %v2906_v35 = vadd.f32 %v2905_v29, %v2904_v47  ;;  %v1887_v60 = vadd.f32 %v1835_v17, %v1609_v2  ;;  %v4963_v2 = vld [vmem:[#allocation7_spill] sm:$0xff] }
 0x291   : > { %v2443_v43 = vadd.f32 %v2389_v49, %v2165_v14  ;;  %v2667_v31 = vpop.f32.mrf.mxu0 }
 0x293   : > { %v2721_v6 = vadd.f32 %v2667_v31, %v2443_v43  ;;  %v1613_v31 = vadd.f32 %v4964_v22, %v4963_v2 }
 0x295   : > { %2753 = vst.msk [vmem:[%s4536_s4 + $0xa8] sm:$0xff] %vm182_vm1, %v2721_v6  ;;  %v2805_v42 = vsel %vm182_vm1, %v2721_v6, 0.0  ;;  %v2855_v40 = vmul.f32 %v2721_v6, %v2721_v6 }
 0x296   : > { %v2114_v3 = vpop.f32.mrf.mxu2  ;;  %v2806_v21 = vadd.f32 %v2805_v42, %v2804_v23 }
 0x297   : > { %v2166_v36 = vadd.f32 %v2114_v3, %v1887_v60  ;;  %v1838_v18 = vpop.f32.mrf.mxu1  ;;  %v2392_v9 = vpop.f32.mrf.mxu3  ;;  %v2907_v33 = vsel %vm182_vm1, %v2855_v40, 0.0 }
 0x298   : > { %v2908_v37 = vadd.f32 %v2907_v33, %v2906_v35  ;;  %v1888_v0 = vadd.f32 %v1838_v18, %v1610_v11 }
 0x299   : > { %v2444_v54 = vadd.f32 %v2392_v9, %v2166_v36  ;;  %v2670_v15 = vpop.f32.mrf.mxu0 }
 0x29b   : > { %v2722_v7 = vadd.f32 %v2670_v15, %v2444_v54  ;;  %v4965_v15 = vld [vmem:[#allocation9_spill] sm:$0xff] }
 0x29d   : > { %2754 = vst.msk [vmem:[%s4536_s4 + $0xb0] sm:$0xff] %vm182_vm1, %v2722_v7  ;;  %v2807_v28 = vsel %vm182_vm1, %v2722_v7, 0.0  ;;  %v2856_v41 = vmul.f32 %v2722_v7, %v2722_v7 }
 0x29e   : > { %v2117_v38 = vpop.f32.mrf.mxu2  ;;  %v2808_v51 = vadd.f32 %v2807_v28, %v2806_v21 }
 0x29f   : > { %v2167_v53 = vadd.f32 %v2117_v38, %v1888_v0  ;;  %v1841_v52 = vpop.f32.mrf.mxu1  ;;  %v2395_v12 = vpop.f32.mrf.mxu3  ;;  %v2909_v56 = vsel %vm182_vm1, %v2856_v41, 0.0  ;;  %v1614_v0 = vadd.f32 %v4470_v19, %v4965_v15 }
 0x2a0   : > { %v2910_v63 = vadd.f32 %v2909_v56, %v2908_v37  ;;  %v1889_v30 = vadd.f32 %v1841_v52, %v1611_v26 }
 0x2a1   : > { %v2445_v24 = vadd.f32 %v2395_v12, %v2167_v53  ;;  %v2673_v10 = vpop.f32.mrf.mxu0 }
 0x2a3   : > { %v2723_v4 = vadd.f32 %v2673_v10, %v2445_v24 }
 0x2a5   : > { %2755 = vst.msk [vmem:[%s4536_s4 + $0xb8] sm:$0xff] %vm182_vm1, %v2723_v4  ;;  %v2809_v55 = vsel %vm182_vm1, %v2723_v4, 0.0  ;;  %v2857_v45 = vmul.f32 %v2723_v4, %v2723_v4 }
 0x2a6   : > { %v2120_v32 = vpop.f32.mrf.mxu2  ;;  %v2810_v20 = vadd.f32 %v2809_v55, %v2808_v51 }
 0x2a7   : > { %v2168_v16 = vadd.f32 %v2120_v32, %v1889_v30  ;;  %v1844_v59 = vpop.f32.mrf.mxu1  ;;  %v2398_v61 = vpop.f32.mrf.mxu3  ;;  %v2911_v44 = vsel %vm182_vm1, %v2857_v45, 0.0  ;;  %v4966_v30 = vld [vmem:[#allocation10_spill] sm:$0xff] }
 0x2a8   : > { %v2912_v58 = vadd.f32 %v2911_v44, %v2910_v63  ;;  %v1890_v1 = vadd.f32 %v1844_v59, %v1612_v27  ;;  %v1615_v19 = vadd.f32 %v4482_v5, %v4966_v30  ;;  %v1616_v5 = vadd.f32 %v4494_v46, %v4488_v48  ;;  %v4967_v48 = vld [vmem:[#allocation29_spill] sm:$0xff] }
 0x2a9   : > { %v2446_v47 = vadd.f32 %v2398_v61, %v2168_v16  ;;  %v2676_v25 = vpop.f32.mrf.mxu0  ;;  %v1617_v46 = vadd.f32 %v4967_v48, %v4500_v62  ;;  %v4968_v62 = vld [vmem:[#allocation12_spill] sm:$0xff] }
 0x2ab   : > { %v2724_v13 = vadd.f32 %v2676_v25, %v2446_v47 }
 0x2ad   : > { %2756 = vst.msk [vmem:[%s4536_s4 + $0xc0] sm:$0xff] %vm182_vm1, %v2724_v13  ;;  %v2811_v39 = vsel %vm182_vm1, %v2724_v13, 0.0  ;;  %v2858_v34 = vmul.f32 %v2724_v13, %v2724_v13 }
 0x2ae   : > { %v2123_v50 = vpop.f32.mrf.mxu2  ;;  %v2812_v23 = vadd.f32 %v2811_v39, %v2810_v20 }
 0x2af   : > { %v2169_v14 = vadd.f32 %v2123_v50, %v1890_v1  ;;  %v1847_v17 = vpop.f32.mrf.mxu1  ;;  %v2401_v49 = vpop.f32.mrf.mxu3  ;;  %v2913_v29 = vsel %vm182_vm1, %v2858_v34, 0.0 }
 0x2b0   : > { %v2914_v35 = vadd.f32 %v2913_v29, %v2912_v58  ;;  %v1891_v6 = vadd.f32 %v1847_v17, %v1613_v31 }
 0x2b1   : > { %v2447_v43 = vadd.f32 %v2401_v49, %v2169_v14  ;;  %v2679_v60 = vpop.f32.mrf.mxu0 }
 0x2b3   : > { %v2725_v3 = vadd.f32 %v2679_v60, %v2447_v43 }
 0x2b5   : > { %2757 = vst.msk [vmem:[%s4536_s4 + $0xc8] sm:$0xff] %vm182_vm1, %v2725_v3  ;;  %v2813_v40 = vsel %vm182_vm1, %v2725_v3, 0.0  ;;  %v2859_v36 = vmul.f32 %v2725_v3, %v2725_v3 }
 0x2b6   : > { %v2126_v42 = vpop.f32.mrf.mxu2  ;;  %v2814_v33 = vadd.f32 %v2813_v40, %v2812_v23 }
 0x2b7   : > { %v2170_v18 = vadd.f32 %v2126_v42, %v1891_v6  ;;  %v1850_v9 = vpop.f32.mrf.mxu1  ;;  %v2404_v21 = vpop.f32.mrf.mxu3  ;;  %v2915_v54 = vsel %vm182_vm1, %v2859_v36, 0.0 }
 0x2b8   : > { %v2916_v11 = vadd.f32 %v2915_v54, %v2914_v35  ;;  %v1892_v38 = vadd.f32 %v1850_v9, %v1614_v0  ;;  %v1618_v54 = vadd.f32 %v4968_v62, %v4512_v8 }
 0x2b9   : > { %v2448_v37 = vadd.f32 %v2404_v21, %v2170_v18  ;;  %v2682_v7 = vpop.f32.mrf.mxu0 }
 0x2bb   : > { %v2726_v28 = vadd.f32 %v2682_v7, %v2448_v37 }
 0x2bd   : > { %2758 = vst.msk [vmem:[%s4536_s4 + $0xd0] sm:$0xff] %vm182_vm1, %v2726_v28  ;;  %v2815_v53 = vsel %vm182_vm1, %v2726_v28, 0.0  ;;  %v2860_v52 = vmul.f32 %v2726_v28, %v2726_v28 }
 0x2be   : > { %v2129_v41 = vpop.f32.mrf.mxu2  ;;  %v2816_v24 = vadd.f32 %v2815_v53, %v2814_v33 }
 0x2bf   : > { %v2171_v12 = vadd.f32 %v2129_v41, %v1892_v38  ;;  %v1853_v51 = vpop.f32.mrf.mxu1  ;;  %v2407_v56 = vpop.f32.mrf.mxu3  ;;  %v2917_v63 = vsel %vm182_vm1, %v2860_v52, 0.0 }
 0x2c0   : > { %v2918_v10 = vadd.f32 %v2917_v63, %v2916_v11  ;;  %v1893_v32 = vadd.f32 %v1853_v51, %v1615_v19 }
 0x2c1   : > { %v2449_v26 = vadd.f32 %v2407_v56, %v2171_v12  ;;  %v2685_v4 = vpop.f32.mrf.mxu0 }
 0x2c3   : > { %v2727_v55 = vadd.f32 %v2685_v4, %v2449_v26 }
 0x2c5   : > { %2759 = vst.msk [vmem:[%s4536_s4 + $0xd8] sm:$0xff] %vm182_vm1, %v2727_v55  ;;  %v2817_v16 = vsel %vm182_vm1, %v2727_v55, 0.0  ;;  %v2861_v59 = vmul.f32 %v2727_v55, %v2727_v55 }
 0x2c6   : > { %v2132_v45 = vpop.f32.mrf.mxu2  ;;  %v2818_v47 = vadd.f32 %v2817_v16, %v2816_v24 }
 0x2c7   : > { %v2172_v61 = vadd.f32 %v2132_v45, %v1893_v32  ;;  %v1856_v20 = vpop.f32.mrf.mxu1  ;;  %v2410_v44 = vpop.f32.mrf.mxu3  ;;  %v2919_v58 = vsel %vm182_vm1, %v2861_v59, 0.0 }
 0x2c8   : > { %v2920_v27 = vadd.f32 %v2919_v58, %v2918_v10  ;;  %v1894_v1 = vadd.f32 %v1856_v20, %v1616_v5 }
 0x2c9   : > { %v2450_v57 = vadd.f32 %v2410_v44, %v2172_v61  ;;  %v2688_v25 = vpop.f32.mrf.mxu0 }
 0x2cb   : > { %v2728_v13 = vadd.f32 %v2688_v25, %v2450_v57 }
 0x2cd   : > { %2760 = vst.msk [vmem:[%s4536_s4 + $0xe0] sm:$0xff] %vm182_vm1, %v2728_v13  ;;  %v2819_v39 = vsel %vm182_vm1, %v2728_v13, 0.0  ;;  %v2862_v34 = vmul.f32 %v2728_v13, %v2728_v13 }
 0x2ce   : > { %v2135_v50 = vpop.f32.mrf.mxu2  ;;  %v2820_v49 = vadd.f32 %v2819_v39, %v2818_v47 }
 0x2cf   : > { %v2173_v14 = vadd.f32 %v2135_v50, %v1894_v1  ;;  %v2413_v17 = vpop.f32.mrf.mxu3  ;;  %v1859_v23 = vpop.f32.mrf.mxu1  ;;  %v2921_v29 = vsel %vm182_vm1, %v2862_v34, 0.0 }
 0x2d0   : > { %v2922_v35 = vadd.f32 %v2921_v29, %v2920_v27  ;;  %v1895_v22 = vadd.f32 %v1859_v23, %v1617_v46 }
 0x2d1   : > { %v2451_v43 = vadd.f32 %v2413_v17, %v2173_v14  ;;  %v2691_v2 = vpop.f32.mrf.mxu0 }
 0x2d3   : > { %v2729_v31 = vadd.f32 %v2691_v2, %v2451_v43 }
 0x2d5   : > { %2761 = vst.msk [vmem:[%s4536_s4 + $0xe8] sm:$0xff] %vm182_vm1, %v2729_v31  ;;  %v2821_v6 = vsel %vm182_vm1, %v2729_v31, 0.0  ;;  %v2863_v3 = vmul.f32 %v2729_v31, %v2729_v31 }
 0x2d6   : > { %v2138_v60 = vpop.f32.mrf.mxu2  ;;  %v2822_v36 = vadd.f32 %v2821_v6, %v2820_v49 }
 0x2d7   : > { %v2174_v42 = vadd.f32 %v2138_v60, %v1895_v22  ;;  %v2416_v40 = vpop.f32.mrf.mxu3  ;;  %v2923_v18 = vsel %vm182_vm1, %v2863_v3, 0.0  ;;  %v1862_v33 = vpop.f32.mrf.mxu1 }
 0x2d8   : > { %v2924_v21 = vadd.f32 %v2923_v18, %v2922_v35  ;;  %v1896_v11 = vadd.f32 %v1862_v33, %v1618_v54 }
 0x2d9   : > { %v2452_v9 = vadd.f32 %v2416_v40, %v2174_v42  ;;  %v2694_v37 = vpop.f32.mrf.mxu0 }
 0x2db   : > { %v2730_v15 = vadd.f32 %v2694_v37, %v2452_v9 }
 0x2dd   : > { %2762 = vst.msk [vmem:[%s4536_s4 + $0xf0] sm:$0xff] %vm182_vm1, %v2730_v15  ;;  %v2823_v7 = vsel %vm182_vm1, %v2730_v15, 0.0  ;;  %v2864_v38 = vmul.f32 %v2730_v15, %v2730_v15 }
 0x2de   : > { %v2141_v0 = vpop.f32.mrf.mxu2  ;;  %v2824_v53 = vadd.f32 %v2823_v7, %v2822_v36 }
 0x2df   : > { %v2175_v28 = vadd.f32 %v2141_v0, %v1896_v11  ;;  %v2419_v41 = vpop.f32.mrf.mxu3  ;;  %v2925_v52 = vsel %vm182_vm1, %v2864_v38, 0.0 }
 0x2e0   : > { %v2926_v51 = vadd.f32 %v2925_v52, %v2924_v21 }
 0x2e1   : > { %v2453_v12 = vadd.f32 %v2419_v41, %v2175_v28  ;;  %v2697_v8 = vpop.f32.mrf.mxu0 }
 0x2e3   : > { %v2731_v56 = vadd.f32 %v2697_v8, %v2453_v12 }
 0x2e5   : > { %2763 = vst.msk [vmem:[%s4536_s4 + $0xf8] sm:$0xff] %vm182_vm1, %v2731_v56  ;;  %v2825_v24 = vsel %vm182_vm1, %v2731_v56, 0.0  ;;  %v2865_v63 = vmul.f32 %v2731_v56, %v2731_v56 }
 0x2e6   : > { %v2826_v26 = vadd.f32 %v2825_v24, %v2824_v53 }
 0x2e7   : > { %v2927_v10 = vsel %vm182_vm1, %v2865_v63, 0.0 }
 0x2e8   : > { %v2827_v30 = vrot.slane %v2826_v26, 4  ;;  %v2928_v19 = vadd.f32 %v2927_v10, %v2926_v51 }
 0x2ea   : > { %v2828_v4 = vadd.f32 %v2827_v30, %v2826_v26  ;;  %v2929_v32 = vrot.slane %v2928_v19, 4 }
 0x2ec   : > { %v2829_v55 = vrot.slane %v2828_v4, 2  ;;  %v2930_v45 = vadd.f32 %v2929_v32, %v2928_v19 }
 0x2ee   : > { %v2830_v16 = vadd.f32 %v2829_v55, %v2828_v4  ;;  %v2931_v59 = vrot.slane %v2930_v45, 2 }
 0x2f0   : > { %v2831_v61 = vrot.slane %v2830_v16, 1  ;;  %v2932_v20 = vadd.f32 %v2931_v59, %v2930_v45 }
 0x2f2   : > { %v2832_v44 = vadd.f32 %v2831_v61, %v2830_v16  ;;  %v2933_v47 = vrot.slane %v2932_v20, 1 }
 0x2f4   : > { %2833 = vst.msk [vmem:[%s171_s11] sm:$0x1] %vm191_vm3, %v2832_v44  ;;  %v2934_v58 = vadd.f32 %v2933_v47, %v2932_v20 }
 0x2f6   : > { %2935 = vst.msk [vmem:[%s171_s11 + $0x1] sm:$0x1] %vm191_vm3, %v2934_v58 }
 0x2f7   : > { %3434 = shalt.err (!%p3431_p3)
}
 0x2f8   : > { %3367 = dma.vmem_to_hbm [thread:$0]  (%p3530_p5), %s2958_s17, 32, %s2960_s19, %s2942_s16  }
 0x2f9 PF: > { %p3373_p4 = scmp.ge.s32.totalorder %s3469_s15, 2  ;;  %s2979_s30 = sand.u32 1, %s3457_s12  }
 0x2fa   : > { %s2980_s4 = scalar_lea.sflag [#allocation4], %s2979_s30 }
 0x2fb   : > { %p3370_p7 = pnand %p3373_p4, %p3534_p6 }
 0x2fd   : > { %p3371_p8 = pneg %p3370_p7 }
 0x2ff   : > { %3452 = dma.done.wait (%p3371_p8), %s2980_s4, 32  }
 0x300   : > { %3454 = vsyncadd (%p3371_p8), %s2980_s4, 4294967264  ;;  %p14_p9 = scmp.ge.s32.totalorder %s3517_s18, 4   ;;  %s4969_s12 = smov %s3461_s13 }
 0x301   : > { %s4970_s13 = smov %s3465_s14  ;;  %s4971_s14 = smov %s3528_s21 }
 0x302   : > { %s4972_s15 = smov %s3517_s18  ;;  %16 = sbr.rel (!%p14_p9) target bundleno = 3 (0x3), region = 86 }
 0x307   :  { %2986 = vsyncpa [#allocation4], 1 }
 0x308   :  { %2988 = vsyncpa [#allocation4 + $0x1], 1 }

</bundles_post_ra>
